<compile_context>
chip_gen: v5e
topology: v5e:2x2
jax: 0.10.0
libtpu: 0.0.40
codegen_flags: <defaults>
</compile_context>

<pallas_src>
import functools

import jax
import jax.numpy as jnp
from jax import lax
from jax.experimental import pallas as pl
from jax.experimental.pallas import tpu as pltpu

LANE = 128


def _round_up(x, m):
    return (x + m - 1) // m * m


# ---------------------------------------------------------------------------
# Hardware-aware sizing (TPU generation -> row tile / VMEM limit).
# ---------------------------------------------------------------------------
@functools.lru_cache(maxsize=1)
def _hardware_params():
    kind = ""
    try:
        kind = jax.devices()[0].device_kind.lower()
    except Exception:
        pass
    vmem_cap = None
    try:
        vmem_cap = int(pltpu.get_tpu_info().vmem_capacity_bytes)
    except Exception:
        vmem_cap = None
    if vmem_cap is None or vmem_cap <= 0:
        # v7x has 64 MiB per TensorCore; v5e/v6e have 128 MiB.
        vmem_cap = (64 if ("v7" in kind or "7x" in kind) else 128) * 1024 * 1024
    is_v5e = ("v5 lite" in kind) or ("v5e" in kind) or ("v5litepod" in kind)
    tm_pref = 128 if is_v5e else 256       # 256-wide MXU on v6e / v7x
    vmem_limit = max(32 * 1024 * 1024,
                     min(vmem_cap * 5 // 8, 100 * 1024 * 1024))
    return tm_pref, vmem_limit


def _select_tiles(N, tm_pref, vmem_limit, h_pad, c_pad, tk_max=None):
    """Pick (row tile tm, padded node count n_pad, adj K tile tk)."""
    if N < 128:
        tm = max(16, _round_up(N, 16))     # bf16 sublane packing -> 16
        return tm, tm, tm
    tm = tm_pref
    # Keep >= 2 row steps so both v7x TensorCores get work.
    if _round_up(N, tm) // tm < 2 and _round_up(N, 128) // 128 >= 2:
        tm = 128
    n_pad = _round_up(N, tm)

    budget = vmem_limit // 2
    cands = [4096, 2048, 1024, 512, 256, 128]
    if tk_max is not None:
        cands = [c for c in cands if c <= tk_max]
    tk = 128                                # always divides n_pad here
    for cand in cands:
        if cand > n_pad or n_pad % cand:
            continue
        n_buf = 3 if n_pad // cand >= 3 else 2
        foot = (n_buf * tm * cand * 2              # streamed adj tiles (bf16)
                + 2 * cand * h_pad * 2             # streamed hs tiles (bf16)
                + 2 * h_pad * c_pad * 2            # resident W2 (double buffered)
                + 2 * tm * c_pad * 2               # output tile
                + tm * h_pad * 4 + tm * c_pad * 4) # f32 accumulators
        if foot <= budget:
            tk = cand
            break
    return tm, n_pad, tk


# ---------------------------------------------------------------------------
# Shared epilogue: row-wise log_softmax over the first `nclass` lanes.
# ---------------------------------------------------------------------------
def _masked_log_softmax(logits, nclass):
    cols = lax.broadcasted_iota(jnp.int32, logits.shape, 1)
    valid = cols < nclass
    logits = jnp.where(valid, logits, jnp.float32(-1e30))
    m = jnp.max(logits, axis=1, keepdims=True)
    shifted = logits - m
    lse = jnp.log(jnp.sum(jnp.where(valid, jnp.exp(shifted), 0.0),
                          axis=1, keepdims=True))
    return shifted - lse


# ---------------------------------------------------------------------------
# Fully fused kernel (small graphs, everything VMEM-resident, one launch).
# ---------------------------------------------------------------------------
def fused_forward_kernel(x_ref, a_ref, d_ref, w1_ref, b1_ref, w2_ref, b2_ref,
                         out_ref, *, nclass):
    f32 = jnp.float32
    d = d_ref[...]
    hs1 = (jnp.dot(x_ref[...], w1_ref[...], preferred_element_type=f32)
           * d).astype(jnp.bfloat16)
    h1 = jnp.maximum(
        jnp.dot(a_ref[...], hs1, preferred_element_type=f32) * d + b1_ref[...],
        0.0)
    # dropout p=0 (eval mode) -> identity.
    hs2 = (jnp.dot(h1.astype(jnp.bfloat16), w2_ref[...],
                   preferred_element_type=f32) * d).astype(jnp.bfloat16)
    logits = jnp.dot(a_ref[...], hs2, preferred_element_type=f32) * d + b2_ref[...]
    out_ref[...] = _masked_log_softmax(logits, nclass)


# ---------------------------------------------------------------------------
# Tiled kernel 1 (row-tiled): layer-1 node transform with D^-1/2 folded in.
#   hs1[r] = d[r] * (x[r] @ W1)           (bf16 out, f32 MXU accumulation)
# ---------------------------------------------------------------------------
def transform_kernel(x_ref, d_ref, w_ref, hs_ref):
    xw = jnp.dot(x_ref[...], w_ref[...], preferred_element_type=jnp.float32)
    hs_ref[...] = (xw * d_ref[...]).astype(hs_ref.dtype)


# ---------------------------------------------------------------------------
# Tiled kernel 2 (rows x K grid): layer-1 aggregation accumulated over K tiles
# of A_hat, then bias + ReLU fused with the layer-2 transform in the K epilogue
# (so h1 never round-trips through HBM).
#   acc  = sum_k A_hat[i,k] @ hs1[k]
#   h1   = relu(d_rows * acc + b1)
#   hs2  = d_rows * (h1 @ W2)
# ---------------------------------------------------------------------------
def agg_relu_transform_kernel(adj_ref, hs1_ref, d_ref, b1_ref, w2_ref,
                              hs2_ref, acc_ref):
    @pl.when(pl.program_id(1) == 0)
    def _():
        acc_ref[...] = jnp.zeros_like(acc_ref)

    acc_ref[...] += jnp.dot(adj_ref[...], hs1_ref[...],
                            preferred_element_type=jnp.float32)

    @pl.when(pl.program_id(1) == pl.num_programs(1) - 1)
    def _():
        h1 = jnp.maximum(acc_ref[...] * d_ref[...] + b1_ref[...], 0.0)
        # dropout p=0 (eval mode) -> identity.
        hw = jnp.dot(h1.astype(w2_ref.dtype), w2_ref[...],
                     preferred_element_type=jnp.float32)
        hs2_ref[...] = (hw * d_ref[...]).astype(hs2_ref.dtype)


# ---------------------------------------------------------------------------
# Tiled kernel 3 (rows x K grid): layer-2 aggregation accumulated over K tiles,
# then bias + masked row-wise log_softmax in the K epilogue.
# ---------------------------------------------------------------------------
def agg_logsoftmax_kernel(adj_ref, hs2_ref, d_ref, b2_ref, out_ref, acc_ref,
                          *, nclass):
    @pl.when(pl.program_id(1) == 0)
    def _():
        acc_ref[...] = jnp.zeros_like(acc_ref)

    acc_ref[...] += jnp.dot(adj_ref[...], hs2_ref[...],
                            preferred_element_type=jnp.float32)

    @pl.when(pl.program_id(1) == pl.num_programs(1) - 1)
    def _():
        logits = acc_ref[...] * d_ref[...] + b2_ref[...]
        out_ref[...] = _masked_log_softmax(logits, nclass)


# ---------------------------------------------------------------------------
# Input prep: A_hat = A + I directly in bf16 (no padded f32 N^2 intermediate),
# d = (deg(A)+1)^-1/2 from the raw adjacency, zero-padded bf16 operands.
# ---------------------------------------------------------------------------
def _prep_inputs(x, adj, w1, b1, w2, b2, n_pad, f_pad, h_pad, c_pad):
    N, nfeat = x.shape
    nhid = w1.shape[1]
    nclass = w2.shape[1]
    f32, bf16 = jnp.float32, jnp.bfloat16

    a_hat = jnp.zeros((n_pad, n_pad), bf16).at[:N, :N].set(adj.astype(bf16))
    diag = jnp.arange(N)
    a_hat = a_hat.at[diag, diag].add(jnp.asarray(1.0, bf16))   # A + I

    deg = jnp.sum(adj.astype(f32), axis=1) + 1.0
    d = jnp.where(deg > 0, lax.rsqrt(deg), 0.0)
    d_p = jnp.zeros((n_pad, 1), f32).at[:N, 0].set(d)

    x_p = jnp.zeros((n_pad, f_pad), bf16).at[:N, :nfeat].set(x.astype(bf16))
    w1_p = jnp.zeros((f_pad, h_pad), bf16).at[:nfeat, :nhid].set(w1.astype(bf16))
    b1_p = jnp.zeros((1, h_pad), f32).at[:, :nhid].set(
        b1.astype(f32).reshape(1, nhid))
    w2_p = jnp.zeros((h_pad, c_pad), bf16).at[:nhid, :nclass].set(w2.astype(bf16))
    b2_p = jnp.zeros((1, c_pad), f32).at[:, :nclass].set(
        b2.astype(f32).reshape(1, nclass))
    return x_p, a_hat, d_p, w1_p, b1_p, w2_p, b2_p


# ---------------------------------------------------------------------------
# Wrapper: fused path for VMEM-sized graphs, K-tiled streaming path otherwise.
# ---------------------------------------------------------------------------
def base_gnn_forward(x, adj, w1, b1, w2, b2, *, force_tiled=False, tk_max=None):
    """2-layer GCN forward on a raw dense adjacency (normalization fused)."""
    N, nfeat = x.shape
    nhid = w1.shape[1]
    nclass = w2.shape[1]
    f32, bf16 = jnp.float32, jnp.bfloat16

    tm_pref, vmem_limit = _hardware_params()
    f_pad = _round_up(nfeat, LANE)
    h_pad = _round_up(nhid, LANE)
    c_pad = _round_up(nclass, LANE)

    # ---- fully fused single-launch path (graph fits comfortably in VMEM) ----
    n_small = _round_up(max(N, 16), 16)
    fused_bytes = (2 * n_small * n_small
                   + n_small * (2 * f_pad + 8 * h_pad + 12 * c_pad + 8)
                   + 2 * (f_pad * h_pad + h_pad * c_pad)
                   + 8 * (h_pad + c_pad))
    if (not force_tiled) and fused_bytes <= vmem_limit // 2:
        n_pad = n_small
        x_p, a_hat, d_p, w1_p, b1_p, w2_p, b2_p = _prep_inputs(
            x, adj, w1, b1, w2, b2, n_pad, f_pad, h_pad, c_pad)
        out_pad = pl.pallas_call(
            functools.partial(fused_forward_kernel, nclass=nclass),
            out_shape=jax.ShapeDtypeStruct((n_pad, c_pad), f32),
            compiler_params=pltpu.CompilerParams(vmem_limit_bytes=vmem_limit),
            cost_estimate=pl.CostEstimate(
                flops=2 * n_pad * (f_pad * h_pad + n_pad * h_pad
                                   + h_pad * c_pad + n_pad * c_pad),
                transcendentals=n_pad * c_pad,
                bytes_accessed=2 * n_pad * n_pad + 2 * n_pad * f_pad
                + 4 * n_pad * c_pad),
        )(x_p, a_hat, d_p, w1_p, b1_p, w2_p, b2_p)
        return out_pad[:N, :nclass]

    # ---- K-tiled streaming path (VMEM footprint independent of N) ----
    tm, n_pad, tk = _select_tiles(N, tm_pref, vmem_limit, h_pad, c_pad, tk_max)
    row_steps = n_pad // tm
    k_steps = n_pad // tk

    x_p, a_hat, d_p, w1_p, b1_p, w2_p, b2_p = _prep_inputs(
        x, adj, w1, b1, w2, b2, n_pad, f_pad, h_pad, c_pad)

    cparams_1d = pltpu.CompilerParams(dimension_semantics=("parallel",),
                                      vmem_limit_bytes=vmem_limit)
    cparams_2d = pltpu.CompilerParams(
        dimension_semantics=("parallel", "arbitrary"),
        vmem_limit_bytes=vmem_limit)

    def adj_spec():
        # Deeper pipelining on the HBM-bound adjacency stream when K >= 3.
        if k_steps >= 3:
            try:
                return pl.BlockSpec((tm, tk), lambda i, k: (i, k),
                                    pipeline_mode=pl.Buffered(3))
            except TypeError:       # older jax without pipeline_mode
                pass
        return pl.BlockSpec((tm, tk), lambda i, k: (i, k))

    # ---- layer-1 transform: hs1 = d * (X @ W1) ----
    hs1 = pl.pallas_call(
        transform_kernel,
        out_shape=jax.ShapeDtypeStruct((n_pad, h_pad), bf16),
        grid=(row_steps,),
        in_specs=[pl.BlockSpec((tm, f_pad), lambda i: (i, 0)),
                  pl.BlockSpec((tm, 1), lambda i: (i, 0)),
                  pl.BlockSpec((f_pad, h_pad), lambda i: (0, 0))],
        out_specs=pl.BlockSpec((tm, h_pad), lambda i: (i, 0)),
        compiler_params=cparams_1d,
        cost_estimate=pl.CostEstimate(
            flops=2 * n_pad * f_pad * h_pad + 2 * n_pad * h_pad,
            transcendentals=0,
            bytes_accessed=2 * (n_pad * f_pad + f_pad * h_pad + n_pad * h_pad)
            + 4 * n_pad),
    )(x_p, d_p, w1_p)

    # ---- layer-1 aggregation (K-tiled) + ReLU, fused with layer-2 transform ----
    hs2 = pl.pallas_call(
        agg_relu_transform_kernel,
        out_shape=jax.ShapeDtypeStruct((n_pad, c_pad), bf16),
        grid=(row_steps, k_steps),
        in_specs=[adj_spec(),
                  pl.BlockSpec((tk, h_pad), lambda i, k: (k, 0)),
                  pl.BlockSpec((tm, 1), lambda i, k: (i, 0)),
                  pl.BlockSpec((1, h_pad), lambda i, k: (0, 0)),
                  pl.BlockSpec((h_pad, c_pad), lambda i, k: (0, 0))],
        out_specs=pl.BlockSpec((tm, c_pad), lambda i, k: (i, 0)),
        scratch_shapes=[pltpu.VMEM((tm, h_pad), f32)],
        compiler_params=cparams_2d,
        cost_estimate=pl.CostEstimate(
            flops=2 * n_pad * n_pad * h_pad + 2 * n_pad * h_pad * c_pad
            + 4 * n_pad * h_pad,
            transcendentals=0,
            bytes_accessed=2 * n_pad * n_pad + 2 * row_steps * n_pad * h_pad
            + 2 * (n_pad * c_pad + h_pad * c_pad) + 4 * (n_pad + h_pad)),
    )(a_hat, hs1, d_p, b1_p, w2_p)

    # ---- layer-2 aggregation (K-tiled) + bias + masked log_softmax ----
    out_pad = pl.pallas_call(
        functools.partial(agg_logsoftmax_kernel, nclass=nclass),
        out_shape=jax.ShapeDtypeStruct((n_pad, c_pad), f32),
        grid=(row_steps, k_steps),
        in_specs=[adj_spec(),
                  pl.BlockSpec((tk, c_pad), lambda i, k: (k, 0)),
                  pl.BlockSpec((tm, 1), lambda i, k: (i, 0)),
                  pl.BlockSpec((1, c_pad), lambda i, k: (0, 0))],
        out_specs=pl.BlockSpec((tm, c_pad), lambda i, k: (i, 0)),
        scratch_shapes=[pltpu.VMEM((tm, c_pad), f32)],
        compiler_params=cparams_2d,
        cost_estimate=pl.CostEstimate(
            flops=2 * n_pad * n_pad * c_pad + 8 * n_pad * c_pad,
            transcendentals=n_pad * c_pad + n_pad,
            bytes_accessed=2 * n_pad * n_pad + 2 * row_steps * n_pad * c_pad
            + 4 * n_pad * c_pad + 4 * (n_pad + c_pad)),
    )(a_hat, hs2, d_p, b2_p)

    return out_pad[:N, :nclass]


# ---------------------------------------------------------------------------
# JAX references.
# ---------------------------------------------------------------------------
def reference_forward_matched(x, adj, w1, b1, w2, b2):
    """Same math / precision strategy as the kernels (bf16 MXU, f32 acc)."""
    N = x.shape[0]
    f32, bf16 = jnp.float32, jnp.bfloat16
    deg = jnp.sum(adj.astype(f32), axis=1) + 1.0
    d = jnp.where(deg > 0, lax.rsqrt(deg), 0.0).reshape(N, 1)
    a_bf = (adj.astype(f32) + jnp.eye(N, dtype=f32)).astype(bf16)
    hs1 = (jnp.dot(x.astype(bf16), w1.astype(bf16),
                   preferred_element_type=f32) * d).astype(bf16)
    h1 = jnp.maximum(jnp.dot(a_bf, hs1, preferred_element_type=f32) * d + b1, 0.0)
    hs2 = (jnp.dot(h1.astype(bf16), w2.astype(bf16),
                   preferred_element_type=f32) * d).astype(bf16)
    logits = jnp.dot(a_bf, hs2, preferred_element_type=f32) * d + b2
    return jax.nn.log_softmax(logits, axis=1)


def reference_forward_f32(x, adj, w1, b1, w2, b2):
    """Pure-f32: log_softmax(adj_norm @ relu(adj_norm @ xW1 + b1) @ W2 + b2)."""
    N = x.shape[0]
    a_hat = adj + jnp.eye(N, dtype=adj.dtype)
    deg = jnp.sum(a_hat, axis=1)
    d = jnp.where(deg > 0, 1.0 / jnp.sqrt(deg), 0.0)
    adj_norm = a_hat * d[:, None] * d[None, :]
    h = jnp.maximum(adj_norm @ (x @ w1) + b1, 0.0)
    h = adj_norm @ (h @ w2) + b2
    return jax.nn.log_softmax(h, axis=1)


if __name__ == "__main__":
    def make_problem(key, N, nfeat, nhid, nclass):
        kx, ka, kw1, kb1, kw2, kb2 = jax.random.split(key, 6)
        x = jax.random.normal(kx, (N, nfeat), dtype=jnp.float32)
        a_raw = (jax.random.uniform(ka, (N, N)) < 0.05).astype(jnp.float32)
        adj = jnp.triu(a_raw, k=1)
        adj = adj + adj.T                      # symmetric, no self loops

        def glorot(k, fi, fo):
            lim = jnp.sqrt(6.0 / (fi + fo))
            return jax.random.uniform(k, (fi, fo), jnp.float32, -lim, lim)

        w1 = glorot(kw1, nfeat, nhid)
        b1 = jax.random.uniform(kb1, (1, nhid), jnp.float32, -0.1, 0.1)
        w2 = glorot(kw2, nhid, nclass)
        b2 = jax.random.uniform(kb2, (1, nclass), jnp.float32, -0.1, 0.1)
        return x, adj, w1, b1, w2, b2

    key = jax.random.PRNGKey(0)
    k1, k2 = jax.random.split(key)
    nfeat, nhid, nclass = 32, 32, 10

    # Config A: N=256 -> fully fused single-launch path.
    N = 256
    x, adj, w1, b1, w2, b2 = make_problem(k1, N, nfeat, nhid, nclass)
    out_a = jax.block_until_ready(base_gnn_forward(x, adj, w1, b1, w2, b2))
    assert out_a.shape == (N, nclass)
    ref_m = reference_forward_matched(x, adj, w1, b1, w2, b2)
    ref_f = reference_forward_f32(x, adj, w1, b1, w2, b2)
    assert jnp.allclose(out_a, ref_m, atol=2e-3, rtol=2e-3), "fused vs matched ref"
    assert jnp.allclose(out_a, ref_f, atol=5e-2, rtol=5e-2), "fused vs f32 ref"

    # Config B: same graph, forced K-tiled streaming path (2 row x 2 K steps).
    out_b = jax.block_until_ready(
        base_gnn_forward(x, adj, w1, b1, w2, b2, force_tiled=True, tk_max=128))
    assert out_b.shape == (N, nclass)
    assert jnp.allclose(out_b, ref_m, atol=2e-3, rtol=2e-3), "tiled vs matched ref"
    assert jnp.allclose(out_b, ref_f, atol=5e-2, rtol=5e-2), "tiled vs f32 ref"

    # Config C: larger graph -> >=3 K steps (exercises Buffered(3) adj stream).
    N3 = 384
    x3, adj3, w13, b13, w23, b23 = make_problem(k2, N3, nfeat, nhid, nclass)
    out_c = jax.block_until_ready(
        base_gnn_forward(x3, adj3, w13, b13, w23, b23,
                         force_tiled=True, tk_max=128))
    assert out_c.shape == (N3, nclass)
    ref_m3 = reference_forward_matched(x3, adj3, w13, b13, w23, b23)
    assert jnp.allclose(out_c, ref_m3, atol=2e-3, rtol=2e-3), "big tiled vs matched ref"

    print("KERNEL_OK")
</pallas_src>

<mosaic_0001>
module attributes {stable_mosaic.version = 11 : i64} {
  func.func @fused_forward_kernel(%arg0: memref<256x128xbf16, #tpu.memory_space<vmem>>, %arg1: memref<256x256xbf16, #tpu.memory_space<vmem>>, %arg2: memref<256x1xf32, #tpu.memory_space<vmem>>, %arg3: memref<128x128xbf16, #tpu.memory_space<vmem>>, %arg4: memref<1x128xf32, #tpu.memory_space<vmem>>, %arg5: memref<128x128xbf16, #tpu.memory_space<vmem>>, %arg6: memref<1x128xf32, #tpu.memory_space<vmem>>, %arg7: memref<256x128xf32, #tpu.memory_space<vmem>>) attributes {dimension_semantics = [], scalar_prefetch = 0 : i64, scratch_operands = 0 : i64, tpu.core_type = #tpu.core_type<tc>} {
    %c0 = arith.constant 0 : index
    %c0_0 = arith.constant 0 : index
    %0 = vector.load %arg2[%c0, %c0_0] : memref<256x1xf32, #tpu.memory_space<vmem>>, vector<256x1xf32>
    %c0_1 = arith.constant 0 : index
    %c0_2 = arith.constant 0 : index
    %1 = vector.load %arg0[%c0_1, %c0_2] : memref<256x128xbf16, #tpu.memory_space<vmem>>, vector<256x128xbf16>
    %c0_3 = arith.constant 0 : index
    %c0_4 = arith.constant 0 : index
    %2 = vector.load %arg3[%c0_3, %c0_4] : memref<128x128xbf16, #tpu.memory_space<vmem>>, vector<128x128xbf16>
    %cst = arith.constant dense<0.000000e+00> : vector<256x128xf32>
    %3 = tpu.matmul %1, %2, %cst {dimension_numbers = #tpu.dot_dimension_numbers<[1], [0], [0], [1], [0, 0, 1, 1], [], []>} : vector<256x128xbf16>, vector<128x128xbf16>, vector<256x128xf32> -> vector<256x128xf32>
    %4 = vector.broadcast %0 : vector<256x1xf32> to vector<256x128xf32>
    %5 = arith.mulf %3, %4 : vector<256x128xf32>
    %6 = arith.truncf %5 : vector<256x128xf32> to vector<256x128xbf16>
    %c0_5 = arith.constant 0 : index
    %c0_6 = arith.constant 0 : index
    %7 = vector.load %arg1[%c0_5, %c0_6] : memref<256x256xbf16, #tpu.memory_space<vmem>>, vector<256x256xbf16>
    %cst_7 = arith.constant dense<0.000000e+00> : vector<256x128xf32>
    %8 = tpu.matmul %7, %6, %cst_7 {dimension_numbers = #tpu.dot_dimension_numbers<[1], [0], [0], [1], [0, 0, 1, 1], [], []>} : vector<256x256xbf16>, vector<256x128xbf16>, vector<256x128xf32> -> vector<256x128xf32>
    %9 = vector.broadcast %0 : vector<256x1xf32> to vector<256x128xf32>
    %10 = arith.mulf %8, %9 : vector<256x128xf32>
    %c0_8 = arith.constant 0 : index
    %c0_9 = arith.constant 0 : index
    %11 = vector.load %arg4[%c0_8, %c0_9] : memref<1x128xf32, #tpu.memory_space<vmem>>, vector<1x128xf32>
    %12 = vector.broadcast %11 : vector<1x128xf32> to vector<256x128xf32>
    %13 = arith.addf %10, %12 : vector<256x128xf32>
    %cst_10 = arith.constant 0.000000e+00 : f32
    %14 = vector.broadcast %cst_10 : f32 to vector<256x128xf32>
    %15 = arith.maximumf %13, %14 : vector<256x128xf32>
    %16 = arith.truncf %15 : vector<256x128xf32> to vector<256x128xbf16>
    %c0_11 = arith.constant 0 : index
    %c0_12 = arith.constant 0 : index
    %17 = vector.load %arg5[%c0_11, %c0_12] : memref<128x128xbf16, #tpu.memory_space<vmem>>, vector<128x128xbf16>
    %cst_13 = arith.constant dense<0.000000e+00> : vector<256x128xf32>
    %18 = tpu.matmul %16, %17, %cst_13 {dimension_numbers = #tpu.dot_dimension_numbers<[1], [0], [0], [1], [0, 0, 1, 1], [], []>} : vector<256x128xbf16>, vector<128x128xbf16>, vector<256x128xf32> -> vector<256x128xf32>
    %19 = vector.broadcast %0 : vector<256x1xf32> to vector<256x128xf32>
    %20 = arith.mulf %18, %19 : vector<256x128xf32>
    %21 = arith.truncf %20 : vector<256x128xf32> to vector<256x128xbf16>
    %c0_14 = arith.constant 0 : index
    %c0_15 = arith.constant 0 : index
    %22 = vector.load %arg1[%c0_14, %c0_15] : memref<256x256xbf16, #tpu.memory_space<vmem>>, vector<256x256xbf16>
    %cst_16 = arith.constant dense<0.000000e+00> : vector<256x128xf32>
    %23 = tpu.matmul %22, %21, %cst_16 {dimension_numbers = #tpu.dot_dimension_numbers<[1], [0], [0], [1], [0, 0, 1, 1], [], []>} : vector<256x256xbf16>, vector<256x128xbf16>, vector<256x128xf32> -> vector<256x128xf32>
    %24 = vector.broadcast %0 : vector<256x1xf32> to vector<256x128xf32>
    %25 = arith.mulf %23, %24 : vector<256x128xf32>
    %c0_17 = arith.constant 0 : index
    %c0_18 = arith.constant 0 : index
    %26 = vector.load %arg6[%c0_17, %c0_18] : memref<1x128xf32, #tpu.memory_space<vmem>>, vector<1x128xf32>
    %27 = vector.broadcast %26 : vector<1x128xf32> to vector<256x128xf32>
    %28 = arith.addf %25, %27 : vector<256x128xf32>
    %29 = tpu.iota {dimensions = array<i32: 1>} : vector<256x128xi32>
    %c10_i32 = arith.constant 10 : i32
    %30 = vector.broadcast %c10_i32 : i32 to vector<256x128xi32>
    %31 = arith.cmpi slt, %29, %30 : vector<256x128xi32>
    %cst_19 = arith.constant -1.000000e+30 : f32
    %32 = vector.broadcast %cst_19 : f32 to vector<256x128xf32>
    %33 = arith.select %31, %28, %32 : vector<256x128xi1>, vector<256x128xf32>
    %cst_20 = arith.constant dense<0xFF800000> : vector<256xf32>
    %34 = vector.multi_reduction <maximumf>, %33, %cst_20 [1] : vector<256x128xf32> to vector<256xf32>
    %35 = vector.shape_cast %34 : vector<256xf32> to vector<256x1xf32>
    %36 = vector.broadcast %35 : vector<256x1xf32> to vector<256x128xf32>
    %37 = arith.subf %33, %36 : vector<256x128xf32>
    %38 = math.exp %37 : vector<256x128xf32>
    %cst_21 = arith.constant 0.000000e+00 : f32
    %39 = vector.broadcast %cst_21 : f32 to vector<256x128xf32>
    %40 = arith.select %31, %38, %39 : vector<256x128xi1>, vector<256x128xf32>
    %cst_22 = arith.constant dense<0.000000e+00> : vector<256xf32>
    %41 = vector.multi_reduction <add>, %40, %cst_22 [1] : vector<256x128xf32> to vector<256xf32>
    %42 = vector.shape_cast %41 : vector<256xf32> to vector<256x1xf32>
    %43 = math.log %42 : vector<256x1xf32>
    %44 = vector.broadcast %43 : vector<256x1xf32> to vector<256x128xf32>
    %45 = arith.subf %37, %44 : vector<256x128xf32>
    %c0_23 = arith.constant 0 : index
    %c0_24 = arith.constant 0 : index
    %46 = vector.load %arg7[%c0_23, %c0_24] : memref<256x128xf32, #tpu.memory_space<vmem>>, vector<256x128xf32>
    tpu.vector_store %arg7[%c0_23, %c0_24], %45 {strides = array<i32>} : memref<256x128xf32, #tpu.memory_space<vmem>>, vector<256x128xf32>,
    return
  }
}

</mosaic_0001>

<bundles_post_ra>
// kernel: tpu_custom_call.1
= control target key start
LH: loop header
LB: loop body
LE: loop exit
PB: predicated region body
PF: predicated region fallthrough
CT: control target
= control target key end

     0   :  { %12 = vsyncpa [#allocation3], 0  ;;  %s3812_s0 = inlined_call_operand.hbm [shape: bf16[256,128], index: 0, kind: input, shape index: {}]   ;;  %s3813_s1 = inlined_call_operand.vmem [shape: bf16[256,256], index: 1, kind: input, shape index: {}]   ;;  %s3814_s2 = inlined_call_operand.vmem [shape: f32[256,1], index: 2, kind: input, shape index: {}]   ;;  %s3815_s3 = inlined_call_operand.hbm [shape: bf16[128,128], index: 3, kind: input, shape index: {}]   ;;  %s3816_s4 = inlined_call_operand.vmem [shape: f32[1,128], index: 4, kind: input, shape index: {}]   ;;  %s3817_s5 = inlined_call_operand.hbm [shape: bf16[128,128], index: 5, kind: input, shape index: {}]   ;;  %s3818_s6 = inlined_call_operand.vmem [shape: f32[1,128], index: 6, kind: input, shape index: {}]   ;;  %s3819_s7 = inlined_call_operand.hbm [shape: f32[256,128], index: 7, kind: output, shape index: {}]  }
   0x1   :  { %13 = vsyncpa [#allocation6], 0 }
   0x2   :  { %14 = vsyncpa [#allocation4], 0  ;;  %s36_s26 = sshll.u32 %s3815_s3, 4  ;;  %s2547_s27 = smov [#allocation5]   ;;  %s37_s26 = int_to_ptr.hbm [resolvable:$true] %s36_s26 }
   0x3   :  { %s38_s28 = sshll.u32 %s2547_s27, 4  ;;  %s19_s8 = sshll.u32 %s3812_s0, 4  ;;  %s39_s28 = int_to_ptr.vmem [resolvable:$true] %s38_s28  ;;  %s20_s8 = int_to_ptr.hbm [resolvable:$true] %s19_s8 }
   0x4   :  { %s2548_s9 = smov 64   ;;  %s2549_s10 = smov 4  }
   0x5   :  { %44 = dma.hbm_to_vmem [thread:$0]  %s37_s26, 1024, %s39_s28, [#allocation6], %s2548_s9, %s2548_s9, %s2549_s10  }
   0x6   :  { %s2550_s11 = smov [#allocation2]   ;;  %s51_s15 = sshll.u32 %s3817_s5, 4  ;;  %s52_s15 = int_to_ptr.hbm [resolvable:$true] %s51_s15 }
   0x7   :  { %s21_s12 = sshll.u32 %s2550_s11, 4  ;;  %s2551_s3 = smov [#allocation7]   ;;  %s22_s12 = int_to_ptr.vmem [resolvable:$true] %s21_s12 }
   0x8   :  { %27 = dma.hbm_to_vmem [thread:$0]  %s20_s8, 2048, %s22_s12, [#allocation3], %s2548_s9, %s2548_s9, %s2549_s10  }
   0x9   :  { %s53_s16 = sshll.u32 %s2551_s3, 4  ;;  %s54_s16 = int_to_ptr.vmem [resolvable:$true] %s53_s16 }
   0xa   :  { %59 = dma.hbm_to_vmem [thread:$0]  %s52_s15, 1024, %s54_s16, [#allocation6], %s2548_s9, %s2548_s9, %s2549_s10  }
   0xb   :  { %2541 = dma.done.wait [#allocation3], 2048  }
   0xc   :  { %2542 = vsyncadd [#allocation3], 4294965248 }
   0xd   :  { %2543 = dma.done.wait [#allocation6], 2048  }
   0xe   :  { %2544 = vsyncadd [#allocation6], 4294965248  ;;  %v2552_v0 = vmov 0   ;;  %v104_v1 = vld [vmem:[%s3814_s2 + $0xf0] sm:$0xff]  ;;  %v102_v2 = vld [vmem:[%s3814_s2 + $0xe0] sm:$0xff]  ;;  %s2554_s25 = smov 128  }
   0xf   :  { %2313 = vset.pattern.permute.xlu1 %v2552_v0  ;;  %2312 = vset.pattern.permute.xlu0 %v2552_v0  ;;  %v2246_v3 = vld [vmem:[#allocation5 + $0x38] sm:$0xff]  ;;  %v2245_v4 = vld [vmem:[#allocation5 + $0x30] sm:$0xff]  ;;  %v103_v7 = vld [vmem:[%s3814_s2 + $0xe8] sm:$0xff]  ;;  %s2555_s26 = smov 8  }
  0x10   :  { %2314 = vset.pattern.permute.xlu2 %v2552_v0  ;;  %539 = vperm.xlu0 %2312, %v104_v1   ;;  %v88_v5 = vld [vmem:[%s3814_s2 + $0x70] sm:$0xff]  ;;  %v105_v6 = vld [vmem:[%s3814_s2 + $0xf8] sm:$0xff]  ;;  %v2244_v8 = vld [vmem:[#allocation5 + $0x28] sm:$0xff] }
  0x11   :  { %529 = vperm.xlu1 %2313, %v102_v2   ;;  %298 = vmatpush.bf16.msra.mxu0 %v2246_v3  ;;  %v89_v9 = vld [vmem:[%s3814_s2 + $0x78] sm:$0xff]  ;;  %v2243_v10 = vld [vmem:[#allocation5 + $0x20] sm:$0xff]  ;;  %v100_v12 = vld [vmem:[%s3814_s2 + $0xd0] sm:$0xff] }
  0x12   :  { %2287 = vmatpush.bf16.msra.mxu2 %v2246_v3  ;;  %459 = vperm.xlu2 %2314, %v88_v5   ;;  %v101_v11 = vld [vmem:[%s3814_s2 + $0xd8] sm:$0xff]  ;;  %v86_v14 = vld [vmem:[%s3814_s2 + $0x60] sm:$0xff]  ;;  %v2241_v15 = vld [vmem:[#allocation5 + $0x10] sm:$0xff] }
  0x13   :  { %v2242_v13 = vld [vmem:[#allocation5 + $0x18] sm:$0xff]  ;;  %v98_v16 = vld [vmem:[%s3814_s2 + $0xc0] sm:$0xff]  ;;  %v87_v17 = vld [vmem:[%s3814_s2 + $0x68] sm:$0xff] }
  0x14   :  { %v2240_v18 = vld [vmem:[#allocation5 + $0x8] sm:$0xff]  ;;  %v2239_v20 = vld [vmem:[#allocation5] sm:$0xff]  ;;  %v85_v21 = vld [vmem:[%s3814_s2 + $0x58] sm:$0xff] }
  0x15   :  { %299 = vmatpush.bf16.msra.mxu0 %v2245_v4  ;;  %v99_v19 = vld [vmem:[%s3814_s2 + $0xc8] sm:$0xff]  ;;  %v84_v22 = vld [vmem:[%s3814_s2 + $0x50] sm:$0xff]  ;;  %v2223_v23 = vld [vmem:[#allocation2] sm:$0xff] }
  0x16   :  { %2288 = vmatpush.bf16.msra.mxu2 %v2245_v4  ;;  %v2231_v24 = vld [vmem:[#allocation2 + $0x40] sm:$0xff]  ;;  %v96_v25 = vld [vmem:[%s3814_s2 + $0xb0] sm:$0xff]  ;;  %v97_v26 = vld [vmem:[%s3814_s2 + $0xb8] sm:$0xff] }
  0x17   :  { %v82_v27 = vld [vmem:[%s3814_s2 + $0x40] sm:$0xff]  ;;  %v83_v28 = vld [vmem:[%s3814_s2 + $0x48] sm:$0xff]  ;;  %v80_v33 = vld [vmem:[%s3814_s2 + $0x30] sm:$0xff] }
  0x18   :  { %544 = vperm.xlu0 %2312, %v105_v6   ;;  %v94_v29 = vld [vmem:[%s3814_s2 + $0xa0] sm:$0xff]  ;;  %v95_v30 = vld [vmem:[%s3814_s2 + $0xa8] sm:$0xff]  ;;  %v92_v34 = vld [vmem:[%s3814_s2 + $0x90] sm:$0xff] }
  0x19   :  { %534 = vperm.xlu1 %2313, %v103_v7   ;;  %300 = vmatpush.bf16.msra.mxu0 %v2244_v8  ;;  %v2224_v31 = vld [vmem:[#allocation2 + $0x8] sm:$0xff]  ;;  %v81_v35 = vld [vmem:[%s3814_s2 + $0x38] sm:$0xff]  ;;  %v78_v38 = vld [vmem:[%s3814_s2 + $0x20] sm:$0xff] }
  0x1a   :  { %2289 = vmatpush.bf16.msra.mxu2 %v2244_v8  ;;  %464 = vperm.xlu2 %2314, %v89_v9   ;;  %v2232_v32 = vld [vmem:[#allocation2 + $0x48] sm:$0xff]  ;;  %v93_v36 = vld [vmem:[%s3814_s2 + $0x98] sm:$0xff]  ;;  %v2225_v39 = vld [vmem:[#allocation2 + $0x10] sm:$0xff] }
  0x1b   :  { %v79_v37 = vld [vmem:[%s3814_s2 + $0x28] sm:$0xff]  ;;  %v2233_v40 = vld [vmem:[#allocation2 + $0x50] sm:$0xff]  ;;  %v90_v41 = vld [vmem:[%s3814_s2 + $0x80] sm:$0xff] }
  0x1c   :  { %v91_v42 = vld [vmem:[%s3814_s2 + $0x88] sm:$0xff]  ;;  %v76_v43 = vld [vmem:[%s3814_s2 + $0x10] sm:$0xff]  ;;  %v77_v44 = vld [vmem:[%s3814_s2 + $0x18] sm:$0xff] }
  0x1d   :  { %301 = vmatpush.bf16.msra.mxu0 %v2243_v10  ;;  %v75_v45 = vld [vmem:[%s3814_s2 + $0x8] sm:$0xff]  ;;  %v74_v46 = vld [vmem:[%s3814_s2] sm:$0xff]  ;;  %v2226_v47 = vld [vmem:[#allocation2 + $0x18] sm:$0xff] }
  0x1e   :  { %2290 = vmatpush.bf16.msra.mxu2 %v2243_v10  ;;  %v2234_v48 = vld [vmem:[#allocation2 + $0x58] sm:$0xff]  ;;  %v2227_v49 = vld [vmem:[#allocation2 + $0x20] sm:$0xff]  ;;  %v2228_v51 = vld [vmem:[#allocation2 + $0x28] sm:$0xff] }
  0x1f   :  { %v2235_v50 = vld [vmem:[#allocation2 + $0x60] sm:$0xff]  ;;  %v2236_v52 = vld [vmem:[#allocation2 + $0x68] sm:$0xff]  ;;  %v2229_v53 = vld [vmem:[#allocation2 + $0x30] sm:$0xff] }
  0x20   :  { %519 = vperm.xlu0 %2312, %v100_v12   ;;  %v2237_v54 = vld [vmem:[#allocation2 + $0x70] sm:$0xff]  ;;  %v2230_v55 = vld [vmem:[#allocation2 + $0x38] sm:$0xff] }
  0x21   :  { %524 = vperm.xlu1 %2313, %v101_v11   ;;  %302 = vmatpush.bf16.msra.mxu0 %v2242_v13  ;;  %v2238_v56 = vld [vmem:[#allocation2 + $0x78] sm:$0xff] }
  0x22   :  { %2291 = vmatpush.bf16.msra.mxu2 %v2242_v13  ;;  %449 = vperm.xlu2 %2314, %v86_v14  }
  0x25   :  { %303 = vmatpush.bf16.msra.mxu0 %v2241_v15 }
  0x26   :  { %2292 = vmatpush.bf16.msra.mxu2 %v2241_v15 }
  0x28   :  { %454 = vperm.xlu0 %2312, %v87_v17  }
  0x29   :  { %509 = vperm.xlu1 %2313, %v98_v16   ;;  %304 = vmatpush.bf16.msra.mxu0 %v2240_v18 }
  0x2a   :  { %2293 = vmatpush.bf16.msra.mxu2 %v2240_v18  ;;  %514 = vperm.xlu2 %2314, %v99_v19  }
  0x2d   :  { %305 = vmatpush.bf16.msra.mxu0 %v2239_v20 }
  0x2e   :  { %2294 = vmatpush.bf16.msra.mxu2 %v2239_v20 }
  0x30   :  { %439 = vperm.xlu0 %2312, %v84_v22   ;;  %306 = vmatmul.bf16.vlgmr.msra.gmra.mxu0 %v2223_v23 }
  0x31   :  { %444 = vperm.xlu1 %2313, %v85_v21   ;;  %346 = vmatmul.bf16.vlgmr.msra.gmra.mxu2 %v2231_v24 }
  0x32   :  { %499 = vperm.xlu2 %2314, %v96_v25  }
  0x38   :  { %504 = vperm.xlu0 %2312, %v97_v26  }
  0x39   :  { %429 = vperm.xlu1 %2313, %v82_v27  }
  0x3a   :  { %434 = vperm.xlu2 %2314, %v83_v28  }
  0x40   :  { %489 = vperm.xlu0 %2312, %v94_v29   ;;  %311 = vmatmul.bf16.gmra.mxu0 %v2224_v31 }
  0x41   :  { %494 = vperm.xlu1 %2313, %v95_v30   ;;  %351 = vmatmul.bf16.gmra.mxu2 %v2232_v32 }
  0x42   :  { %419 = vperm.xlu2 %2314, %v80_v33  }
  0x48   :  { %424 = vperm.xlu0 %2312, %v81_v35  }
  0x49   :  { %479 = vperm.xlu1 %2313, %v92_v34  }
  0x4a   :  { %484 = vperm.xlu2 %2314, %v93_v36  }
  0x50   :  { %409 = vperm.xlu0 %2312, %v78_v38   ;;  %316 = vmatmul.bf16.gmra.mxu0 %v2225_v39 }
  0x51   :  { %414 = vperm.xlu1 %2313, %v79_v37   ;;  %356 = vmatmul.bf16.gmra.mxu2 %v2233_v40 }
  0x52   :  { %469 = vperm.xlu2 %2314, %v90_v41  }
  0x58   :  { %474 = vperm.xlu0 %2312, %v91_v42  }
  0x59   :  { %399 = vperm.xlu1 %2313, %v76_v43  }
  0x5a   :  { %404 = vperm.xlu2 %2314, %v77_v44  }
  0x60   :  { %389 = vperm.xlu0 %2312, %v74_v46   ;;  %321 = vmatmul.bf16.gmra.mxu0 %v2226_v47 }
  0x61   :  { %394 = vperm.xlu1 %2313, %v75_v45   ;;  %361 = vmatmul.bf16.gmra.mxu2 %v2234_v48 }
  0x6c   :  { %v2731_v8 = vpop.permute.xlu2 %459 }
  0x6d   :  { %3858 = vst [vmem:[#allocation12_spill] sm:$0xff] %v2731_v8 }
  0x70   :  { %326 = vmatmul.bf16.gmra.mxu0 %v2227_v49 }
  0x71   :  { %366 = vmatmul.bf16.gmra.mxu2 %v2235_v50 }
  0x74   :  { %v2741_v13 = vpop.permute.xlu2 %464 }
  0x75   :  { %3859 = vst [vmem:[#allocation13_spill] sm:$0xff] %v2741_v13 }
  0x7c   :  { %v2751_v19 = vpop.permute.xlu2 %449 }
  0x80   :  { %331 = vmatmul.bf16.gmra.mxu0 %v2228_v51 }
  0x81   :  { %371 = vmatmul.bf16.gmra.mxu2 %v2236_v52 }
  0x82   :  { %v2723_v4 = vpop.permute.xlu0 %539 }
  0x83   :  { %v2725_v5 = vpop.permute.xlu1 %529 }
  0x84   :  { %v2757_v25 = vpop.permute.xlu2 %514 }
  0x8a   :  { %v2733_v9 = vpop.permute.xlu0 %544 }
  0x8b   :  { %v2735_v10 = vpop.permute.xlu1 %534 }
  0x8c   :  { %v2763_v30 = vpop.permute.xlu2 %499 }
  0x90   :  { %336 = vmatmul.bf16.gmra.mxu0 %v2229_v53 }
  0x91   :  { %376 = vmatmul.bf16.gmra.mxu2 %v2237_v54 }
  0x92   :  { %v2745_v15 = vpop.permute.xlu0 %519 }
  0x93   :  { %v2747_v16 = vpop.permute.xlu1 %524 }
  0x94   :  { %v2769_v35 = vpop.permute.xlu2 %434 }
  0x9a   :  { %v2753_v21 = vpop.permute.xlu0 %454 }
  0x9b   :  { %3860 = vst [vmem:[#allocation14_spill] sm:$0xff] %v2753_v21  ;;  %v2755_v22 = vpop.permute.xlu1 %509 }
  0x9c   :  { %v2775_v41 = vpop.permute.xlu2 %419 }
  0xa0   :  { %341 = vmatmul.bf16.gmra.mxu0 %v2230_v55 }
  0xa1   :  { %381 = vmatmul.bf16.gmra.mxu2 %v2238_v56 }
  0xa2   :  { %v2759_v26 = vpop.permute.xlu0 %439 }
  0xa3   :  { %v2761_v27 = vpop.permute.xlu1 %444 }
  0xa4   :  { %v2783_v49 = vpop.permute.xlu2 %484 }
  0xaa   :  { %v2765_v31 = vpop.permute.xlu0 %504 }
  0xab   :  { %v2767_v32 = vpop.permute.xlu1 %429 }
  0xad   :  { %v2701_v57 = vpop.f32.mrf.mxu0 }
  0xb2   :  { %v2771_v37 = vpop.permute.xlu0 %489 }
  0xb3   :  { %v2773_v38 = vpop.permute.xlu1 %494 }
  0xb4   :  { %v2703_v58 = vpop.f32.mrf.mxu2 }
  0xb5   :  { %v2705_v59 = vpop.f32.mrf.mxu0 }
  0xba   :  { %v2779_v44 = vpop.permute.xlu0 %424 }
  0xbb   :  { %v2777_v43 = vpop.permute.xlu1 %479 }
  0xbc   :  { %v2707_v60 = vpop.f32.mrf.mxu2 }
  0xbd   :  { %v2709_v61 = vpop.f32.mrf.mxu0 }
  0xc2   :  { %v2788_v53 = vpop.permute.xlu0 %409 }
  0xc3   :  { %v2786_v52 = vpop.permute.xlu1 %414 }
  0xc4   :  { %v2711_v62 = vpop.f32.mrf.mxu2 }
  0xc5   :  { %v2713_v63 = vpop.f32.mrf.mxu0 }
  0xcc   :  { %v2715_v0 = vpop.f32.mrf.mxu2 }
  0xcd   :  { %v2717_v1 = vpop.f32.mrf.mxu0 }
  0xd4   :  { %v2719_v2 = vpop.f32.mrf.mxu2 }
  0xd5   :  { %v2721_v3 = vpop.f32.mrf.mxu0 }
  0xdc   :  { %v2727_v6 = vpop.f32.mrf.mxu2 }
  0xdd   :  { %v2729_v7 = vpop.f32.mrf.mxu0 }
  0xe4   :  { %v2737_v11 = vpop.f32.mrf.mxu2 }
  0xe5   :  { %v2739_v12 = vpop.f32.mrf.mxu0 }
  0xec   :  { %v2743_v14 = vpop.f32.mrf.mxu2 }
  0xed   :  { %v327_v17 = vpop.f32.mrf.mxu0 }
  0xf4   :  { %v2749_v18 = vpop.f32.mrf.mxu2 }
  0xf5   :  { %v329_v20 = vpop.f32.mrf.mxu0 }
  0xfc   :  { %v369_v23 = vpop.f32.mrf.mxu2 }
  0xfd   :  { %v332_v24 = vpop.f32.mrf.mxu0 }
 0x104   :  { %v372_v28 = vpop.f32.mrf.mxu2 }
 0x105   :  { %v334_v29 = vpop.f32.mrf.mxu0 }
 0x106   :  { %v558_v56 = vmul.f32 %v2761_v27, %v334_v29 }
 0x10c   :  { %v374_v33 = vpop.f32.mrf.mxu2 }
 0x10d   :  { %v337_v34 = vpop.f32.mrf.mxu0 }
 0x10e   :  { %v559_v54 = vmul.f32 %v2751_v19, %v337_v34  ;;  %v556_v34 = vmul.f32 %v2769_v35, %v329_v20  ;;  %v573_v20 = vmul.f32 %v2745_v15, %v372_v28  ;;  %v570_v28 = vmul.f32 %v2765_v31, %v2743_v14 }
 0x10f   :  { %v568_v14 = vmul.f32 %v2773_v38, %v2727_v6  ;;  %v566_v6 = vmul.f32 %v2783_v49, %v2715_v0 }
 0x114   :  { %v377_v36 = vpop.f32.mrf.mxu2 }
 0x115   :  { %v339_v39 = vpop.f32.mrf.mxu0 }
 0x116   :  { %v560_v50 = vmul.f32 %v2753_v21, %v339_v39  ;;  %v2799_v21 = vpop.permute.xlu2 %469 }
 0x11c   :  { %v379_v40 = vpop.f32.mrf.mxu2 }
 0x11d   :  { %v342_v42 = vpop.f32.mrf.mxu0  ;;  %v576_v39 = vmul.f32 %v2735_v10, %v379_v40  ;;  %v2804_v40 = vpop.permute.xlu1 %399 }
 0x11e   :  { %v561_v47 = vmul.f32 %v2731_v8, %v342_v42  ;;  %v557_v8 = vmul.f32 %v2759_v26, %v332_v24 }
 0x120   :  { %v584_v29 = vpack.c.bf16 %v558_v56, %v557_v8  ;;  %v2818_v56 = vpop.permute.xlu2 %404 }
 0x124   :  { %v382_v45 = vpop.f32.mrf.mxu2 }
 0x125   :  { %v344_v46 = vpop.f32.mrf.mxu0  ;;  %v577_v42 = vmul.f32 %v2723_v4, %v382_v45  ;;  %v574_v45 = vmul.f32 %v2747_v16, %v374_v33 }
 0x126   :  { %v562_v48 = vmul.f32 %v2741_v13, %v344_v46  ;;  %v585_v13 = vpack.c.bf16 %v560_v50, %v559_v54  ;;  %v2802_v50 = vpop.permute.xlu0 %474  ;;  %v551_v54 = vmul.f32 %v2788_v53, %v2717_v1 }
 0x127   :  { %v592_v33 = vpack.c.bf16 %v574_v45, %v573_v20  ;;  %v563_v20 = vmul.f32 %v2799_v21, %v2703_v58  ;;  %v2073_v58 = vld [vmem:[%s3813_s1 + $0x10] sm:$0xf] }
 0x128   :  { %v586_v51 = vpack.c.bf16 %v562_v48, %v561_v47  ;;  %v555_v48 = vmul.f32 %v2767_v32, %v327_v17  ;;  %v554_v17 = vmul.f32 %v2779_v44, %v2739_v12 }
 0x12a   :  { %787 = vmatpush.bf16.msra.mxu1 %v586_v51  ;;  %2295 = vmatpush.bf16.msra.mxu3 %v586_v51  ;;  %v575_v51 = vmul.f32 %v2725_v5, %v377_v36  ;;  %v583_v8 = vpack.c.bf16 %v556_v34, %v555_v48  ;;  %v572_v36 = vmul.f32 %v2757_v25, %v369_v23  ;;  %v2065_v34 = vld [vmem:[%s3813_s1] sm:$0xf] }
 0x12c   :  { %v384_v55 = vpop.f32.mrf.mxu2  ;;  %v593_v24 = vpack.c.bf16 %v576_v39, %v575_v51 }
 0x12d   :  { %v578_v46 = vmul.f32 %v2733_v9, %v384_v55  ;;  %v552_v55 = vmul.f32 %v2786_v52, %v2721_v3  ;;  %v549_v3 = vmul.f32 %v2804_v40, %v2709_v61 }
 0x12e   :  { %788 = vmatpush.bf16.msra.mxu1 %v585_v13  ;;  %2296 = vmatpush.bf16.msra.mxu3 %v585_v13  ;;  %v553_v13 = vmul.f32 %v2775_v41, %v2729_v7  ;;  %v571_v7 = vmul.f32 %v2755_v22, %v2749_v18  ;;  %v550_v18 = vmul.f32 %v2818_v56, %v2713_v63  ;;  %v2830_v39 = vpop.permute.xlu0 %389 }
 0x12f   :  { %v594_v47 = vpack.c.bf16 %v578_v46, %v577_v42  ;;  %v569_v42 = vmul.f32 %v2763_v30, %v2737_v11  ;;  %v581_v1 = vpack.c.bf16 %v552_v55, %v551_v54  ;;  %v2828_v46 = vpop.permute.xlu1 %394  ;;  %v567_v11 = vmul.f32 %v2771_v37, %v2719_v2  ;;  %v2248_v2 = vld [vmem:[%s3813_s1 + $0x4] sm:$0xf0]  ;;  %v2137_v54 = vld [vmem:[%s3813_s1 + $0x90] sm:$0xf]  ;;  %v2266_v55 = vld [vmem:[%s3813_s1 + $0x94] sm:$0xf0] }
 0x130   :  { %v582_v12 = vpack.c.bf16 %v554_v17, %v553_v13  ;;  %v591_v23 = vpack.c.bf16 %v572_v36, %v571_v7  ;;  %v580_v48 = vpack.c.bf16 %v550_v18, %v549_v3  ;;  %v547_v61 = vmul.f32 %v2830_v39, %v2701_v57  ;;  %v2129_v57 = vld [vmem:[%s3813_s1 + $0x80] sm:$0xf]  ;;  %v2252_v3 = vld [vmem:[%s3813_s1 + $0x24] sm:$0xf0] }
 0x131   :  { %876 = vmatpush.bf16.msrb.mxu2 %v594_v47  ;;  %v590_v47 = vpack.c.bf16 %v570_v28, %v569_v42  ;;  %v548_v63 = vmul.f32 %v2828_v46, %v2705_v59  ;;  %v589_v51 = vpack.c.bf16 %v568_v14, %v567_v11  ;;  %v2264_v59 = vld [vmem:[%s3813_s1 + $0x84] sm:$0xf0]  ;;  %v2856_v45 = vor.u32 %v2248_v2, %v2065_v34  ;;  %v2249_v28 = vld [vmem:[%s3813_s1 + $0x14] sm:$0xf]  ;;  %v2145_v18 = vld [vmem:[%s3813_s1 + $0xa0] sm:$0xf] }
 0x132   :  { %789 = vmatpush.bf16.msra.mxu1 %v584_v29  ;;  %2297 = vmatpush.bf16.msra.mxu3 %v584_v29  ;;  %v565_v29 = vmul.f32 %v2777_v43, %v2711_v62  ;;  %v564_v17 = vmul.f32 %v2802_v50, %v2707_v60  ;;  %v2247_v62 = vld [vmem:[%s3813_s1 + $0x4] sm:$0xf]  ;;  %v2250_v60 = vld [vmem:[%s3813_s1 + $0x14] sm:$0xf0]  ;;  %v2268_v14 = vld [vmem:[%s3813_s1 + $0xa4] sm:$0xf0] }
 0x133   :  { %v579_v0 = vpack.c.bf16 %v548_v63, %v547_v61  ;;  %3861 = vst [vmem:[#allocation15_spill] sm:$0xff] %v2856_v45  ;;  %v2887_v7 = vor.u32 %v2250_v60, %v2073_v58  ;;  %v2916_v11 = vor.u32 %v2268_v14, %v2145_v18  ;;  %v2083_v61 = vld [vmem:[%s3813_s1 + $0x28] sm:$0xf0]  ;;  %v2089_v34 = vld [vmem:[%s3813_s1 + $0x30] sm:$0xf] }
 0x134   :  { %v588_v13 = vpack.c.bf16 %v566_v6, %v565_v29  ;;  %v587_v36 = vpack.c.bf16 %v564_v17, %v563_v20  ;;  %v2254_v6 = vld [vmem:[%s3813_s1 + $0x34] sm:$0xf0]  ;;  %v2253_v29 = vld [vmem:[%s3813_s1 + $0x34] sm:$0xf]  ;;  %v2097_v17 = vld [vmem:[%s3813_s1 + $0x40] sm:$0xf] }
 0x135   :  { %877 = vmatpush.bf16.msrb.mxu2 %v593_v24  ;;  %v2858_v24 = vor.u32 %v2264_v59, %v2129_v57  ;;  %3864 = vst [vmem:[#allocation18_spill] sm:$0xff] %v2887_v7  ;;  %v2270_v2 = vld [vmem:[%s3813_s1 + $0xb4] sm:$0xf0]  ;;  %v2941_v57 = vor.u32 %v2254_v6, %v2089_v34  ;;  %v2256_v20 = vld [vmem:[%s3813_s1 + $0x44] sm:$0xf0] }
 0x136   :  { %790 = vmatpush.bf16.msra.mxu1 %v583_v8  ;;  %2298 = vmatpush.bf16.msra.mxu3 %v583_v8  ;;  %v2067_v8 = vld [vmem:[%s3813_s1 + $0x8] sm:$0xf0]  ;;  %3868 = vst [vmem:[#allocation22_spill] sm:$0xff] %v2916_v11  ;;  %v2255_v60 = vld [vmem:[%s3813_s1 + $0x44] sm:$0xf]  ;;  %v2286_v6 = vld [vmem:[#allocation7 + $0x38] sm:$0xff] }
 0x137   :  { %3862 = vst [vmem:[#allocation16_spill] sm:$0xff] %v2858_v24 }
 0x138   :  { %3870 = vst [vmem:[#allocation24_spill] sm:$0xff] %v2941_v57 }
 0x139   :  { %878 = vmatpush.bf16.msrb.mxu2 %v592_v33  ;;  %v2872_v33 = vor.u32 %v2247_v62, %v2067_v8  ;;  %v2161_v62 = vld [vmem:[%s3813_s1 + $0xc0] sm:$0xf]  ;;  %v2272_v8 = vld [vmem:[%s3813_s1 + $0xc4] sm:$0xf0] }
 0x13a   :  { %791 = vmatpush.bf16.msra.mxu1 %v582_v12  ;;  %2299 = vmatpush.bf16.msra.mxu3 %v582_v12  ;;  %v2889_v12 = vor.u32 %v2266_v55, %v2137_v54  ;;  %v2970_v58 = vor.u32 %v2272_v8, %v2161_v62  ;;  %v2099_v54 = vld [vmem:[%s3813_s1 + $0x48] sm:$0xf0]  ;;  %v2285_v62 = vld [vmem:[#allocation7 + $0x30] sm:$0xff]  ;;  %v2259_v8 = vld [vmem:[%s3813_s1 + $0x64] sm:$0xf] }
 0x13b   :  { %3863 = vst [vmem:[#allocation17_spill] sm:$0xff] %v2872_v33  ;;  %v2980_v55 = vor.u32 %v2255_v60, %v2099_v54  ;;  %v2115_v60 = vld [vmem:[%s3813_s1 + $0x68] sm:$0xf0] }
 0x13c   :  { %3865 = vst [vmem:[#allocation19_spill] sm:$0xff] %v2889_v12  ;;  %v2284_v54 = vld [vmem:[#allocation7 + $0x28] sm:$0xff] }
 0x13d   :  { %879 = vmatpush.bf16.msrb.mxu2 %v591_v23  ;;  %v2075_v23 = vld [vmem:[%s3813_s1 + $0x18] sm:$0xf0]  ;;  %3874 = vst [vmem:[#allocation28_spill] sm:$0xff] %v2970_v58 }
 0x13e   :  { %792 = vmatpush.bf16.msra.mxu1 %v581_v1  ;;  %2300 = vmatpush.bf16.msra.mxu3 %v581_v1  ;;  %v2899_v42 = vor.u32 %v2249_v28, %v2075_v23  ;;  %v2081_v1 = vld [vmem:[%s3813_s1 + $0x20] sm:$0xf]  ;;  %3875 = vst [vmem:[#allocation29_spill] sm:$0xff] %v2980_v55  ;;  %v2105_v28 = vld [vmem:[%s3813_s1 + $0x50] sm:$0xf] }
 0x13f   :  { %v2258_v23 = vld [vmem:[%s3813_s1 + $0x54] sm:$0xf0] }
 0x140   :  { %3866 = vst [vmem:[#allocation20_spill] sm:$0xff] %v2899_v42  ;;  %v2995_v18 = vor.u32 %v2258_v23, %v2105_v28  ;;  %v3034_v28 = vor.u32 %v2259_v8, %v2115_v60  ;;  %v2283_v23 = vld [vmem:[#allocation7 + $0x20] sm:$0xff]  ;;  %v2280_v60 = vld [vmem:[#allocation7 + $0x8] sm:$0xff] }
 0x141   :  { %880 = vmatpush.bf16.msrb.mxu2 %v590_v47  ;;  %v2914_v47 = vor.u32 %v2252_v3, %v2081_v1  ;;  %v2169_v1 = vld [vmem:[%s3813_s1 + $0xd0] sm:$0xf]  ;;  %v2274_v3 = vld [vmem:[%s3813_s1 + $0xd4] sm:$0xf0] }
 0x142   :  { %793 = vmatpush.bf16.msra.mxu1 %v580_v48  ;;  %2301 = vmatpush.bf16.msra.mxu3 %v580_v48  ;;  %v2251_v48 = vld [vmem:[%s3813_s1 + $0x24] sm:$0xf]  ;;  %3876 = vst [vmem:[#allocation30_spill] sm:$0xff] %v2995_v18  ;;  %v2997_v14 = vor.u32 %v2274_v3, %v2169_v1  ;;  %v2121_v1 = vld [vmem:[%s3813_s1 + $0x70] sm:$0xf] }
 0x143   :  { %3867 = vst [vmem:[#allocation21_spill] sm:$0xff] %v2914_v47  ;;  %v2926_v63 = vor.u32 %v2251_v48, %v2083_v61  ;;  %v2257_v48 = vld [vmem:[%s3813_s1 + $0x54] sm:$0xf]  ;;  %v2107_v61 = vld [vmem:[%s3813_s1 + $0x58] sm:$0xf0] }
 0x144   :  { %3877 = vst [vmem:[#allocation31_spill] sm:$0xff] %v2997_v14  ;;  %v3007_v34 = vor.u32 %v2257_v48, %v2107_v61  ;;  %v2262_v3 = vld [vmem:[%s3813_s1 + $0x74] sm:$0xf0]  ;;  %v2185_v48 = vld [vmem:[%s3813_s1 + $0xf0] sm:$0xf] }
 0x145   :  { %881 = vmatpush.bf16.msrb.mxu2 %v589_v51  ;;  %3869 = vst [vmem:[#allocation23_spill] sm:$0xff] %v2926_v63  ;;  %v2153_v51 = vld [vmem:[%s3813_s1 + $0xb0] sm:$0xf]  ;;  %v2278_v61 = vld [vmem:[%s3813_s1 + $0xf4] sm:$0xf0] }
 0x146   :  { %794 = vmatpush.bf16.msra.mxu1 %v579_v0  ;;  %2302 = vmatpush.bf16.msra.mxu3 %v579_v0  ;;  %v2943_v59 = vor.u32 %v2270_v2, %v2153_v51  ;;  %v2091_v0 = vld [vmem:[%s3813_s1 + $0x38] sm:$0xf0]  ;;  %3878 = vst [vmem:[#allocation32_spill] sm:$0xff] %v3007_v34  ;;  %v2113_v51 = vld [vmem:[%s3813_s1 + $0x60] sm:$0xf] }
 0x147   :  { %v2260_v2 = vld [vmem:[%s3813_s1 + $0x64] sm:$0xf0]  ;;  %3881 = vst [vmem:[#allocation35_spill] sm:$0xff] %v3034_v28 }
 0x148   :  { %3871 = vst [vmem:[#allocation25_spill] sm:$0xff] %v2943_v59 }
 0x149   :  { %882 = vmatpush.bf16.msrb.mxu2 %v588_v13  ;;  %795 = vmatmul.bf16.vlgmr.msra.gmra.mxu1 %v2856_v45  ;;  %v2953_v13 = vor.u32 %v2253_v29, %v2091_v0  ;;  %v2177_v29 = vld [vmem:[%s3813_s1 + $0xe0] sm:$0xf]  ;;  %v2276_v0 = vld [vmem:[%s3813_s1 + $0xe4] sm:$0xf0] }
 0x14a   :  { %835 = vmatmul.bf16.vlgmr.msra.gmra.mxu3 %v2858_v24 }
 0x14b   :  { %3872 = vst [vmem:[#allocation26_spill] sm:$0xff] %v2953_v13  ;;  %1145 = vmatpush.bf16.msrb.mxu3 %v2286_v6  ;;  %v2282_v6 = vld [vmem:[#allocation7 + $0x18] sm:$0xff] }
 0x14d   :  { %883 = vmatpush.bf16.msrb.mxu2 %v587_v36  ;;  %v2968_v36 = vor.u32 %v2256_v20, %v2097_v17  ;;  %v3022_v17 = vor.u32 %v2260_v2, %v2113_v51  ;;  %v3024_v20 = vor.u32 %v2276_v0, %v2177_v29  ;;  %v3049_v51 = vor.u32 %v2262_v3, %v2121_v1  ;;  %v2261_v29 = vld [vmem:[%s3813_s1 + $0x74] sm:$0xf]  ;;  %v2123_v0 = vld [vmem:[%s3813_s1 + $0x78] sm:$0xf0]  ;;  %v2263_v1 = vld [vmem:[%s3813_s1 + $0x84] sm:$0xf] }
 0x14e   :  { %v3051_v2 = vor.u32 %v2278_v61, %v2185_v48  ;;  %v3061_v8 = vor.u32 %v2261_v29, %v2123_v0  ;;  %v2131_v3 = vld [vmem:[%s3813_s1 + $0x88] sm:$0xf0] }
 0x14f   :  { %3873 = vst [vmem:[#allocation27_spill] sm:$0xff] %v2968_v36  ;;  %1146 = vmatpush.bf16.msrb.mxu3 %v2285_v62  ;;  %v2281_v62 = vld [vmem:[#allocation7 + $0x10] sm:$0xff]  ;;  %v3070_v48 = vor.u32 %v2263_v1, %v2131_v3  ;;  %v3087_v3 = vld [vmem:[%s3816_s4] ss:$0 sm:$0xff]  ;;  %s1953_s4 = sshll.u32 %s3819_s7, 4  ;;  %s1954_s4 = int_to_ptr.hbm [resolvable:$true] %s1953_s4 }
 0x150   :  { %884 = vmatmul.bf16.vlgmr.msrb.gmra.mxu2 %v2872_v33  ;;  %3879 = vst [vmem:[#allocation33_spill] sm:$0xff] %v3022_v17 }
 0x151   :  { %3880 = vst [vmem:[#allocation34_spill] sm:$0xff] %v3024_v20 }
 0x152   :  { %3882 = vst [vmem:[#allocation36_spill] sm:$0xff] %v3049_v51 }
 0x153   :  { %1147 = vmatpush.bf16.msrb.mxu3 %v2284_v54  ;;  %3883 = vst [vmem:[#allocation37_spill] sm:$0xff] %v3051_v2  ;;  %v2279_v54 = vld [vmem:[#allocation7] sm:$0xff] }
 0x154   :  { %3884 = vst [vmem:[#allocation38_spill] sm:$0xff] %v3061_v8 }
 0x155   :  { %3885 = vst [vmem:[#allocation39_spill] sm:$0xff] %v3070_v48 }
 0x157   :  { %1148 = vmatpush.bf16.msrb.mxu3 %v2283_v23 }
 0x159   :  { %800 = vmatmul.bf16.gmra.mxu1 %v2887_v7 }
 0x15a   :  { %840 = vmatmul.bf16.gmra.mxu3 %v2889_v12 }
 0x15b   :  { %1149 = vmatpush.bf16.msrb.mxu3 %v2282_v6 }
 0x15f   :  { %1150 = vmatpush.bf16.msrb.mxu3 %v2281_v62 }
 0x160   :  { %889 = vmatmul.bf16.gmra.mxu2 %v2899_v42 }
 0x163   :  { %1151 = vmatpush.bf16.msrb.mxu3 %v2280_v60 }
 0x167   :  { %1152 = vmatpush.bf16.msrb.mxu3 %v2279_v54  ;;  %v2265_v54 = vld [vmem:[%s3813_s1 + $0x94] sm:$0xf] }
 0x169   :  { %805 = vmatmul.bf16.gmra.mxu1 %v2914_v47 }
 0x16a   :  { %845 = vmatmul.bf16.gmra.mxu3 %v2916_v11 }
 0x170   :  { %894 = vmatmul.bf16.gmra.mxu2 %v2926_v63 }
 0x179   :  { %810 = vmatmul.bf16.gmra.mxu1 %v2941_v57 }
 0x17a   :  { %850 = vmatmul.bf16.gmra.mxu3 %v2943_v59 }
 0x180   :  { %899 = vmatmul.bf16.gmra.mxu2 %v2953_v13 }
 0x189   :  { %815 = vmatmul.bf16.gmra.mxu1 %v2968_v36 }
 0x18a   :  { %855 = vmatmul.bf16.gmra.mxu3 %v2970_v58 }
 0x190   :  { %904 = vmatmul.bf16.gmra.mxu2 %v2980_v55 }
 0x199   :  { %820 = vmatmul.bf16.gmra.mxu1 %v2995_v18 }
 0x19a   :  { %860 = vmatmul.bf16.gmra.mxu3 %v2997_v14 }
 0x1a0   :  { %909 = vmatmul.bf16.gmra.mxu2 %v3007_v34 }
 0x1a9   :  { %825 = vmatmul.bf16.gmra.mxu1 %v3022_v17 }
 0x1aa   :  { %865 = vmatmul.bf16.gmra.mxu3 %v3024_v20 }
 0x1b0   :  { %914 = vmatmul.bf16.gmra.mxu2 %v3034_v28 }
 0x1b9   :  { %830 = vmatmul.bf16.gmra.mxu1 %v3049_v51 }
 0x1ba   :  { %870 = vmatmul.bf16.gmra.mxu3 %v3051_v2  ;;  %v2139_v2 = vld [vmem:[%s3813_s1 + $0x98] sm:$0xf0] }
 0x1c0   :  { %919 = vmatmul.bf16.gmra.mxu2 %v3061_v8  ;;  %v3089_v8 = vor.u32 %v2265_v54, %v2139_v2  ;;  %v2267_v2 = vld [vmem:[%s3813_s1 + $0xa4] sm:$0xf] }
 0x1c2   :  { %3886 = vst [vmem:[#allocation40_spill] sm:$0xff] %v3089_v8 }
 0x1c6   :  { %v796_v23 = vpop.f32.mrf.mxu1 }
 0x1cd   :  { %v3072_v61 = vpop.f32.mrf.mxu3 }
 0x1ce   :  { %v798_v6 = vpop.f32.mrf.mxu1 }
 0x1d0   :  { %924 = vmatmul.bf16.gmra.mxu2 %v3070_v48 }
 0x1d3   :  { %v885_v29 = vpop.f32.mrf.mxu2 }
 0x1d4   :  { %v886_v62 = vadd.f32 %v885_v29, %v796_v23 }
 0x1d5   :  { %v3075_v0 = vpop.f32.mrf.mxu3 }
 0x1d6   :  { %v801_v60 = vpop.f32.mrf.mxu1  ;;  %v965_v1 = vmul.f32 %v886_v62, %v2830_v39 }
 0x1d8   :  { %v1001_v23 = vadd.f32 %v3087_v3, %v965_v1 }
 0x1da   :  { %v1033_v62 = vmax.f32 %v1001_v23, 0.0 }
 0x1db   :  { %v887_v48 = vpop.f32.mrf.mxu2 }
 0x1dc   :  { %v888_v20 = vadd.f32 %v887_v48, %v798_v6 }
 0x1dd   :  { %v3093_v28 = vpop.f32.mrf.mxu3 }
 0x1de   :  { %v966_v29 = vmul.f32 %v888_v20, %v2828_v46  ;;  %v803_v14 = vpop.f32.mrf.mxu1  ;;  %v2147_v20 = vld [vmem:[%s3813_s1 + $0xa8] sm:$0xf0] }
 0x1e0   :  { %v1002_v58 = vadd.f32 %v3087_v3, %v966_v29  ;;  %929 = vmatmul.bf16.gmra.mxu2 %v3089_v8 }
 0x1e2   :  { %v1034_v34 = vmax.f32 %v1002_v58, 0.0  ;;  %v3106_v58 = vor.u32 %v2267_v2, %v2147_v20  ;;  %v2269_v2 = vld [vmem:[%s3813_s1 + $0xb4] sm:$0xf]  ;;  %v2155_v20 = vld [vmem:[%s3813_s1 + $0xb8] sm:$0xf0] }
 0x1e3   :  { %v890_v55 = vpop.f32.mrf.mxu2 }
 0x1e4   :  { %v1065_v59 = vpack.c.bf16 %v1034_v34, %v1033_v62  ;;  %v891_v13 = vadd.f32 %v890_v55, %v801_v60  ;;  %3887 = vst [vmem:[#allocation41_spill] sm:$0xff] %v3106_v58 }
 0x1e5   :  { %v3103_v6 = vpop.f32.mrf.mxu3 }
 0x1e6   :  { %1153 = vmatmul.bf16.vlgmr.msrb.gmra.mxu3 %v1065_v59  ;;  %v806_v48 = vpop.f32.mrf.mxu1  ;;  %v967_v54 = vmul.f32 %v891_v13, %v2804_v40 }
 0x1e8   :  { %v1003_v59 = vadd.f32 %v3087_v3, %v967_v54 }
 0x1ea   :  { %v1035_v29 = vmax.f32 %v1003_v59, 0.0 }
 0x1eb   :  { %v892_v1 = vpop.f32.mrf.mxu2 }
 0x1ec   :  { %v893_v23 = vadd.f32 %v892_v1, %v803_v14 }
 0x1ed   :  { %v3112_v11 = vpop.f32.mrf.mxu3 }
 0x1ee   :  { %v968_v55 = vmul.f32 %v893_v23, %v2818_v56  ;;  %v808_v34 = vpop.f32.mrf.mxu1 }
 0x1f0   :  { %934 = vmatmul.bf16.gmra.mxu2 %v3106_v58  ;;  %v1004_v60 = vadd.f32 %v3087_v3, %v968_v55  ;;  %v3121_v55 = vor.u32 %v2269_v2, %v2155_v20  ;;  %v2271_v20 = vld [vmem:[%s3813_s1 + $0xc4] sm:$0xf] }
 0x1f2   :  { %v1036_v62 = vmax.f32 %v1004_v60, 0.0  ;;  %3888 = vst [vmem:[#allocation42_spill] sm:$0xff] %v3121_v55 }
 0x1f3   :  { %v895_v8 = vpop.f32.mrf.mxu2 }
 0x1f4   :  { %v1066_v63 = vpack.c.bf16 %v1036_v62, %v1035_v29  ;;  %v896_v13 = vadd.f32 %v895_v8, %v806_v48 }
 0x1f5   :  { %v3123_v59 = vpop.f32.mrf.mxu3 }
 0x1f6   :  { %1158 = vmatmul.bf16.gmra.mxu3 %v1066_v63  ;;  %v811_v14 = vpop.f32.mrf.mxu1  ;;  %v969_v54 = vmul.f32 %v896_v13, %v2788_v53 }
 0x1f8   :  { %v1005_v63 = vadd.f32 %v3087_v3, %v969_v54  ;;  %v2163_v54 = vld [vmem:[%s3813_s1 + $0xc8] sm:$0xf0] }
 0x1fa   :  { %v1037_v29 = vmax.f32 %v1005_v63, 0.0  ;;  %v3138_v63 = vor.u32 %v2271_v20, %v2163_v54  ;;  %v2273_v20 = vld [vmem:[%s3813_s1 + $0xd4] sm:$0xf]  ;;  %v2171_v54 = vld [vmem:[%s3813_s1 + $0xd8] sm:$0xf0] }
 0x1fb   :  { %v897_v1 = vpop.f32.mrf.mxu2 }
 0x1fc   :  { %v898_v23 = vadd.f32 %v897_v1, %v808_v34  ;;  %3889 = vst [vmem:[#allocation43_spill] sm:$0xff] %v3138_v63 }
 0x1fd   :  { %v3129_v2 = vpop.f32.mrf.mxu3 }
 0x1fe   :  { %v970_v8 = vmul.f32 %v898_v23, %v2786_v52  ;;  %v813_v48 = vpop.f32.mrf.mxu1 }
 0x200   :  { %939 = vmatmul.bf16.gmra.mxu2 %v3121_v55  ;;  %v1006_v60 = vadd.f32 %v3087_v3, %v970_v8 }
 0x202   :  { %v1038_v62 = vmax.f32 %v1006_v60, 0.0 }
 0x203   :  { %v900_v58 = vpop.f32.mrf.mxu2 }
 0x204   :  { %v1067_v12 = vpack.c.bf16 %v1038_v62, %v1037_v29  ;;  %v901_v13 = vadd.f32 %v900_v58, %v811_v14 }
 0x205   :  { %v3144_v29 = vpop.f32.mrf.mxu3 }
 0x206   :  { %1163 = vmatmul.bf16.gmra.mxu3 %v1067_v12  ;;  %v816_v34 = vpop.f32.mrf.mxu1  ;;  %v971_v1 = vmul.f32 %v901_v13, %v2775_v41 }
 0x208   :  { %v1007_v12 = vadd.f32 %v3087_v3, %v971_v1 }
 0x20a   :  { %v1039_v62 = vmax.f32 %v1007_v12, 0.0  ;;  %v3155_v12 = vor.u32 %v2273_v20, %v2171_v54  ;;  %v2179_v20 = vld [vmem:[%s3813_s1 + $0xe8] sm:$0xf0] }
 0x20b   :  { %v902_v23 = vpop.f32.mrf.mxu2 }
 0x20c   :  { %v903_v8 = vadd.f32 %v902_v23, %v813_v48  ;;  %3890 = vst [vmem:[#allocation44_spill] sm:$0xff] %v3155_v12 }
 0x20e   :  { %v972_v58 = vmul.f32 %v903_v8, %v2779_v44  ;;  %v818_v14 = vpop.f32.mrf.mxu1  ;;  %v3153_v8 = vpop.f32.mrf.mxu3 }
 0x210   :  { %944 = vmatmul.bf16.gmra.mxu2 %v3138_v63  ;;  %v1008_v60 = vadd.f32 %v3087_v3, %v972_v58 }
 0x212   :  { %v1040_v55 = vmax.f32 %v1008_v60, 0.0 }
 0x213   :  { %v905_v42 = vpop.f32.mrf.mxu2 }
 0x214   :  { %v1068_v24 = vpack.c.bf16 %v1040_v55, %v1039_v62  ;;  %v906_v13 = vadd.f32 %v905_v42, %v816_v34 }
 0x216   :  { %1168 = vmatmul.bf16.gmra.mxu3 %v1068_v24  ;;  %v821_v48 = vpop.f32.mrf.mxu1  ;;  %v973_v1 = vmul.f32 %v906_v13, %v2767_v32  ;;  %v3161_v13 = vpop.f32.mrf.mxu3 }
 0x218   :  { %v1009_v42 = vadd.f32 %v3087_v3, %v973_v1 }
 0x21a   :  { %v1041_v34 = vmax.f32 %v1009_v42, 0.0 }
 0x21b   :  { %v907_v23 = vpop.f32.mrf.mxu2 }
 0x21c   :  { %v908_v58 = vadd.f32 %v907_v23, %v818_v14  ;;  %v2275_v14 = vld [vmem:[%s3813_s1 + $0xe4] sm:$0xf] }
 0x21e   :  { %v974_v24 = vmul.f32 %v908_v58, %v2769_v35  ;;  %v823_v62 = vpop.f32.mrf.mxu1  ;;  %v3170_v58 = vor.u32 %v2275_v14, %v2179_v20  ;;  %v2277_v20 = vld [vmem:[%s3813_s1 + $0xf4] sm:$0xf] }
 0x220   :  { %v1010_v55 = vadd.f32 %v3087_v3, %v974_v24  ;;  %949 = vmatmul.bf16.gmra.mxu2 %v3155_v12  ;;  %3891 = vst [vmem:[#allocation45_spill] sm:$0xff] %v3170_v58 }
 0x222   :  { %v1042_v60 = vmax.f32 %v1010_v55, 0.0 }
 0x223   :  { %v910_v63 = vpop.f32.mrf.mxu2 }
 0x224   :  { %v1069_v33 = vpack.c.bf16 %v1042_v60, %v1041_v34  ;;  %v911_v51 = vadd.f32 %v910_v63, %v821_v48 }
 0x226   :  { %1173 = vmatmul.bf16.gmra.mxu3 %v1069_v33  ;;  %v975_v54 = vmul.f32 %v911_v51, %v2759_v26  ;;  %v826_v42 = vpop.f32.mrf.mxu1  ;;  %v3174_v33 = vpop.f32.mrf.mxu3 }
 0x228   :  { %v1011_v24 = vadd.f32 %v3087_v3, %v975_v54  ;;  %v2187_v54 = vld [vmem:[%s3813_s1 + $0xf8] sm:$0xf0] }
 0x22a   :  { %v1043_v55 = vmax.f32 %v1011_v24, 0.0 }
 0x22b   :  { %v912_v1 = vpop.f32.mrf.mxu2 }
 0x22c   :  { %v913_v23 = vadd.f32 %v912_v1, %v823_v62 }
 0x22e   :  { %v976_v63 = vmul.f32 %v913_v23, %v2761_v27  ;;  %v828_v62 = vpop.f32.mrf.mxu1  ;;  %v3178_v14 = vpop.f32.mrf.mxu3 }
 0x230   :  { %v1012_v48 = vadd.f32 %v3087_v3, %v976_v63  ;;  %954 = vmatmul.bf16.gmra.mxu2 %v3170_v58  ;;  %v3187_v63 = vor.u32 %v2277_v20, %v2187_v54 }
 0x232   :  { %v1044_v34 = vmax.f32 %v1012_v48, 0.0  ;;  %3892 = vst [vmem:[#allocation46_spill] sm:$0xff] %v3187_v63 }
 0x233   :  { %v915_v60 = vpop.f32.mrf.mxu2 }
 0x234   :  { %v1070_v12 = vpack.c.bf16 %v1044_v34, %v1043_v55  ;;  %v916_v51 = vadd.f32 %v915_v60, %v826_v42 }
 0x236   :  { %1178 = vmatmul.bf16.gmra.mxu3 %v1070_v12  ;;  %v977_v1 = vmul.f32 %v916_v51, %v2751_v19  ;;  %v3893_v12 = vld [vmem:[#allocation14_spill] sm:$0xff]  ;;  %v831_v34 = vpop.f32.mrf.mxu1  ;;  %v3193_v17 = vpop.f32.mrf.mxu3 }
 0x238   :  { %v1013_v42 = vadd.f32 %v3087_v3, %v977_v1 }
 0x23a   :  { %v1045_v60 = vmax.f32 %v1013_v42, 0.0 }
 0x23b   :  { %v917_v23 = vpop.f32.mrf.mxu2 }
 0x23c   :  { %v918_v24 = vadd.f32 %v917_v23, %v828_v62  ;;  %v3894_v62 = vld [vmem:[#allocation12_spill] sm:$0xff] }
 0x23e   :  { %v978_v48 = vmul.f32 %v918_v24, %v3893_v12  ;;  %v833_v54 = vpop.f32.mrf.mxu1  ;;  %v3196_v57 = vpop.f32.mrf.mxu3 }
 0x240   :  { %v1014_v55 = vadd.f32 %v3087_v3, %v978_v48  ;;  %959 = vmatmul.bf16.gmra.mxu2 %v3187_v63  ;;  %v3895_v48 = vld [vmem:[#allocation13_spill] sm:$0xff] }
 0x242   :  { %v1046_v58 = vmax.f32 %v1014_v55, 0.0 }
 0x243   :  { %v920_v18 = vpop.f32.mrf.mxu2 }
 0x244   :  { %v1071_v36 = vpack.c.bf16 %v1046_v58, %v1045_v60  ;;  %v921_v51 = vadd.f32 %v920_v18, %v831_v34 }
 0x246   :  { %1183 = vmatmul.bf16.gmra.mxu3 %v1071_v36  ;;  %v979_v20 = vmul.f32 %v921_v51, %v3894_v62  ;;  %v3202_v36 = vpop.f32.mrf.mxu3 }
 0x248   :  { %v1015_v24 = vadd.f32 %v3087_v3, %v979_v20 }
 0x24a   :  { %v1047_v55 = vmax.f32 %v1015_v24, 0.0 }
 0x24b   :  { %v922_v23 = vpop.f32.mrf.mxu2 }
 0x24c   :  { %v923_v1 = vadd.f32 %v922_v23, %v833_v54 }
 0x24e   :  { %v980_v63 = vmul.f32 %v923_v1, %v3895_v48  ;;  %v3209_v54 = vpop.f32.mrf.mxu3 }
 0x250   :  { %v1016_v42 = vadd.f32 %v3087_v3, %v980_v63 }
 0x252   :  { %v1048_v47 = vmax.f32 %v1016_v42, 0.0 }
 0x253   :  { %v925_v7 = vpop.f32.mrf.mxu2 }
 0x254   :  { %v1072_v45 = vpack.c.bf16 %v1048_v47, %v1047_v55  ;;  %v926_v18 = vadd.f32 %v925_v7, %v3072_v61 }
 0x256   :  { %1188 = vmatmul.bf16.gmra.mxu3 %v1072_v45  ;;  %v981_v58 = vmul.f32 %v926_v18, %v2799_v21 }
 0x258   :  { %v1017_v51 = vadd.f32 %v3087_v3, %v981_v58 }
 0x25a   :  { %v1049_v23 = vmax.f32 %v1017_v51, 0.0 }
 0x25b   :  { %v927_v34 = vpop.f32.mrf.mxu2 }
 0x25c   :  { %v928_v60 = vadd.f32 %v927_v34, %v3075_v0 }
 0x25e   :  { %v982_v20 = vmul.f32 %v928_v60, %v2802_v50 }
 0x260   :  { %v1018_v63 = vadd.f32 %v3087_v3, %v982_v20 }
 0x262   :  { %v1050_v47 = vmax.f32 %v1018_v63, 0.0 }
 0x263   :  { %v930_v1 = vpop.f32.mrf.mxu2 }
 0x264   :  { %v1073_v7 = vpack.c.bf16 %v1050_v47, %v1049_v23  ;;  %v931_v45 = vadd.f32 %v930_v1, %v3093_v28 }
 0x266   :  { %1193 = vmatmul.bf16.gmra.mxu3 %v1073_v7  ;;  %v983_v24 = vmul.f32 %v931_v45, %v2777_v43 }
 0x268   :  { %v1019_v55 = vadd.f32 %v3087_v3, %v983_v24 }
 0x269   :  { %v1154_v61 = vpop.f32.mrf.mxu3 }
 0x26a   :  { %v1051_v60 = vmax.f32 %v1019_v55, 0.0  ;;  %v3218_v51 = vmul.f32 %v1154_v61, %v2830_v39 }
 0x26b   :  { %v932_v42 = vpop.f32.mrf.mxu2 }
 0x26c   :  { %v933_v0 = vadd.f32 %v932_v42, %v3103_v6 }
 0x26e   :  { %v984_v18 = vmul.f32 %v933_v0, %v2783_v49 }
 0x270   :  { %v1020_v58 = vadd.f32 %v3087_v3, %v984_v18 }
 0x271   :  { %v1156_v34 = vpop.f32.mrf.mxu3 }
 0x272   :  { %v1052_v20 = vmax.f32 %v1020_v58, 0.0  ;;  %v3221_v28 = vmul.f32 %v1156_v34, %v2828_v46 }
 0x273   :  { %v935_v63 = vpop.f32.mrf.mxu2 }
 0x274   :  { %v1074_v23 = vpack.c.bf16 %v1052_v20, %v1051_v60  ;;  %v936_v47 = vadd.f32 %v935_v63, %v3112_v11 }
 0x276   :  { %1198 = vmatmul.bf16.gmra.mxu3 %v1074_v23  ;;  %v985_v7 = vmul.f32 %v936_v47, %v2771_v37 }
 0x278   :  { %v1021_v61 = vadd.f32 %v3087_v3, %v985_v7 }
 0x279   :  { %v1159_v1 = vpop.f32.mrf.mxu3 }
 0x27a   :  { %v1053_v18 = vmax.f32 %v1021_v61, 0.0  ;;  %v3232_v58 = vmul.f32 %v1159_v1, %v2804_v40 }
 0x27b   :  { %v937_v45 = vpop.f32.mrf.mxu2 }
 0x27c   :  { %v938_v24 = vadd.f32 %v937_v45, %v3123_v59 }
 0x27e   :  { %v986_v42 = vmul.f32 %v938_v24, %v2773_v38 }
 0x280   :  { %v1022_v0 = vadd.f32 %v3087_v3, %v986_v42 }
 0x281   :  { %v1161_v55 = vpop.f32.mrf.mxu3 }
 0x282   :  { %v1054_v34 = vmax.f32 %v1022_v0, 0.0  ;;  %v3235_v11 = vmul.f32 %v1161_v55, %v2818_v56 }
 0x283   :  { %v940_v60 = vpop.f32.mrf.mxu2 }
 0x284   :  { %v1075_v20 = vpack.c.bf16 %v1054_v34, %v1053_v18  ;;  %v941_v63 = vadd.f32 %v940_v60, %v3129_v2 }
 0x286   :  { %1203 = vmatmul.bf16.gmra.mxu3 %v1075_v20  ;;  %v987_v47 = vmul.f32 %v941_v63, %v2763_v30 }
 0x288   :  { %v1023_v1 = vadd.f32 %v3087_v3, %v987_v47 }
 0x289   :  { %v1164_v23 = vpop.f32.mrf.mxu3 }
 0x28a   :  { %v1055_v0 = vmax.f32 %v1023_v1, 0.0  ;;  %v3246_v55 = vmul.f32 %v1164_v23, %v2788_v53 }
 0x28b   :  { %v942_v7 = vpop.f32.mrf.mxu2 }
 0x28c   :  { %v943_v45 = vadd.f32 %v942_v7, %v3144_v29 }
 0x28e   :  { %v988_v24 = vmul.f32 %v943_v45, %v2765_v31 }
 0x290   :  { %v1024_v61 = vadd.f32 %v3087_v3, %v988_v24 }
 0x291   :  { %v1166_v42 = vpop.f32.mrf.mxu3 }
 0x292   :  { %v1056_v18 = vmax.f32 %v1024_v61, 0.0  ;;  %v3249_v2 = vmul.f32 %v1166_v42, %v2786_v52 }
 0x293   :  { %v945_v34 = vpop.f32.mrf.mxu2 }
 0x294   :  { %v1076_v60 = vpack.c.bf16 %v1056_v18, %v1055_v0  ;;  %v946_v20 = vadd.f32 %v945_v34, %v3153_v8 }
 0x296   :  { %1208 = vmatmul.bf16.gmra.mxu3 %v1076_v60  ;;  %v989_v47 = vmul.f32 %v946_v20, %v2755_v22 }
 0x298   :  { %v1025_v23 = vadd.f32 %v3087_v3, %v989_v47 }
 0x299   :  { %v1169_v63 = vpop.f32.mrf.mxu3 }
 0x29a   :  { %v1057_v42 = vmax.f32 %v1025_v23, 0.0  ;;  %v3260_v0 = vmul.f32 %v1169_v63, %v2775_v41 }
 0x29b   :  { %v947_v7 = vpop.f32.mrf.mxu2 }
 0x29c   :  { %v948_v45 = vadd.f32 %v947_v7, %v3161_v13 }
 0x29e   :  { %v990_v1 = vmul.f32 %v948_v45, %v2757_v25 }
 0x2a0   :  { %v1026_v24 = vadd.f32 %v3087_v3, %v990_v1 }
 0x2a1   :  { %v1171_v61 = vpop.f32.mrf.mxu3 }
 0x2a2   :  { %v1058_v18 = vmax.f32 %v1026_v24, 0.0  ;;  %v3263_v8 = vmul.f32 %v1171_v61, %v2779_v44 }
 0x2a3   :  { %v950_v34 = vpop.f32.mrf.mxu2 }
 0x2a4   :  { %v1077_v60 = vpack.c.bf16 %v1058_v18, %v1057_v42  ;;  %v1269_v13 = vpack.c.bf16 %v3263_v8, %v3260_v0  ;;  %v951_v20 = vadd.f32 %v950_v34, %v3174_v33  ;;  %v3899_v8 = vld [vmem:[#allocation15_spill] sm:$0xff] }
 0x2a6   :  { %1213 = vmatmul.bf16.gmra.mxu3 %v1077_v60  ;;  %v991_v7 = vmul.f32 %v951_v20, %v2745_v15 }
 0x2a8   :  { %v1027_v63 = vadd.f32 %v3087_v3, %v991_v7 }
 0x2a9   :  { %v1174_v47 = vpop.f32.mrf.mxu3 }
 0x2aa   :  { %v1059_v42 = vmax.f32 %v1027_v63, 0.0 }
 0x2ab   :  { %v952_v45 = vpop.f32.mrf.mxu2 }
 0x2ac   :  { %v953_v23 = vadd.f32 %v952_v45, %v3178_v14 }
 0x2ae   :  { %v992_v1 = vmul.f32 %v953_v23, %v2747_v16 }
 0x2b0   :  { %v1028_v24 = vadd.f32 %v3087_v3, %v992_v1 }
 0x2b1   :  { %v1176_v61 = vpop.f32.mrf.mxu3 }
 0x2b2   :  { %v1060_v18 = vmax.f32 %v1028_v24, 0.0 }
 0x2b3   :  { %v955_v6 = vpop.f32.mrf.mxu2 }
 0x2b4   :  { %v1078_v59 = vpack.c.bf16 %v1060_v18, %v1059_v42  ;;  %v956_v33 = vadd.f32 %v955_v6, %v3193_v17 }
 0x2b6   :  { %1218 = vmatmul.bf16.gmra.mxu3 %v1078_v59  ;;  %v993_v60 = vmul.f32 %v956_v33, %v2725_v5 }
 0x2b8   :  { %v1029_v7 = vadd.f32 %v3087_v3, %v993_v60 }
 0x2b9   :  { %v1179_v34 = vpop.f32.mrf.mxu3 }
 0x2ba   :  { %v1061_v63 = vmax.f32 %v1029_v7, 0.0 }
 0x2bb   :  { %v957_v20 = vpop.f32.mrf.mxu2 }
 0x2bc   :  { %v958_v14 = vadd.f32 %v957_v20, %v3196_v57 }
 0x2be   :  { %v994_v45 = vmul.f32 %v958_v14, %v2735_v10 }
 0x2c0   :  { %v1030_v23 = vadd.f32 %v3087_v3, %v994_v45 }
 0x2c1   :  { %v1181_v1 = vpop.f32.mrf.mxu3 }
 0x2c2   :  { %v1062_v24 = vmax.f32 %v1030_v23, 0.0 }
 0x2c3   :  { %v960_v29 = vpop.f32.mrf.mxu2 }
 0x2c4   :  { %v1079_v42 = vpack.c.bf16 %v1062_v24, %v1061_v63  ;;  %v961_v17 = vadd.f32 %v960_v29, %v3202_v36 }
 0x2c6   :  { %1223 = vmatmul.bf16.gmra.mxu3 %v1079_v42  ;;  %v995_v59 = vmul.f32 %v961_v17, %v2723_v4 }
 0x2c8   :  { %v1031_v33 = vadd.f32 %v3087_v3, %v995_v59  ;;  %v1245_v59 = vmul.f32 %v1181_v1, %v2761_v27 }
 0x2c9   :  { %v1184_v6 = vpop.f32.mrf.mxu3 }
 0x2ca   :  { %v1063_v7 = vmax.f32 %v1031_v33, 0.0  ;;  %v1246_v17 = vmul.f32 %v1184_v6, %v2751_v19  ;;  %v1243_v33 = vmul.f32 %v1176_v61, %v2769_v35  ;;  %v3896_v61 = vpack.c.bf16 %v3249_v2, %v3246_v55 }
 0x2cb   :  { %v962_v18 = vpop.f32.mrf.mxu2 }
 0x2cc   :  { %v963_v57 = vadd.f32 %v962_v18, %v3209_v54 }
 0x2ce   :  { %v996_v60 = vmul.f32 %v963_v57, %v2733_v9  ;;  %v1244_v57 = vmul.f32 %v1179_v34, %v2759_v26 }
 0x2d0   :  { %v1032_v20 = vadd.f32 %v3087_v3, %v996_v60  ;;  %v1271_v60 = vpack.c.bf16 %v1245_v59, %v1244_v57  ;;  %v3902_v57 = vld [vmem:[#allocation24_spill] sm:$0xff] }
 0x2d1   :  { %v1186_v14 = vpop.f32.mrf.mxu3 }
 0x2d2   :  { %v1064_v45 = vmax.f32 %v1032_v20, 0.0  ;;  %v1247_v42 = vmul.f32 %v1186_v14, %v3893_v12  ;;  %v1242_v20 = vmul.f32 %v1174_v47, %v2767_v32  ;;  %v3897_v47 = vpack.c.bf16 %v3235_v11, %v3232_v58  ;;  %v3900_v11 = vld [vmem:[#allocation18_spill] sm:$0xff] }
 0x2d4   :  { %v1080_v23 = vpack.c.bf16 %v1064_v45, %v1063_v7  ;;  %v1272_v3 = vpack.c.bf16 %v1247_v42, %v1246_v17  ;;  %v1270_v7 = vpack.c.bf16 %v1243_v33, %v1242_v20  ;;  %v3903_v20 = vld [vmem:[#allocation27_spill] sm:$0xff] }
 0x2d6   :  { %1228 = vmatmul.bf16.gmra.mxu3 %v1080_v23 }
 0x2d9   :  { %v1189_v63 = vpop.f32.mrf.mxu3 }
 0x2da   :  { %v1248_v29 = vmul.f32 %v1189_v63, %v3894_v62 }
 0x2e1   :  { %v1191_v36 = vpop.f32.mrf.mxu3 }
 0x2e2   :  { %v1249_v24 = vmul.f32 %v1191_v36, %v3895_v48 }
 0x2e4   :  { %v1273_v54 = vpack.c.bf16 %v1249_v24, %v1248_v29  ;;  %v3898_v29 = vpack.c.bf16 %v3221_v28, %v3218_v51  ;;  %v3901_v28 = vld [vmem:[#allocation21_spill] sm:$0xff] }
 0x2e6   :  { %1282 = vmatpush.bf16.msrb.mxu0 %v1273_v54 }
 0x2e9   :  { %v1194_v18 = vpop.f32.mrf.mxu3 }
 0x2ea   :  { %1283 = vmatpush.bf16.msrb.mxu0 %v1272_v3  ;;  %v1250_v14 = vmul.f32 %v1194_v18, %v2799_v21 }
 0x2ee   :  { %1284 = vmatpush.bf16.msrb.mxu0 %v1271_v60 }
 0x2f1   :  { %v1196_v45 = vpop.f32.mrf.mxu3 }
 0x2f2   :  { %v1251_v6 = vmul.f32 %v1196_v45, %v2802_v50  ;;  %1285 = vmatpush.bf16.msrb.mxu0 %v1270_v7 }
 0x2f4   :  { %v1274_v23 = vpack.c.bf16 %v1251_v6, %v1250_v14  ;;  %v3904_v14 = vld [vmem:[#allocation30_spill] sm:$0xff] }
 0x2f6   :  { %1286 = vmatpush.bf16.msrb.mxu0 %v1269_v13 }
 0x2f9   :  { %v1199_v34 = vpop.f32.mrf.mxu3 }
 0x2fa   :  { %1287 = vmatpush.bf16.msrb.mxu0 %v3896_v61  ;;  %v1252_v63 = vmul.f32 %v1199_v34, %v2777_v43 }
 0x2fe   :  { %1288 = vmatpush.bf16.msrb.mxu0 %v3897_v47 }
 0x301   :  { %v1201_v1 = vpop.f32.mrf.mxu3 }
 0x302   :  { %v1253_v36 = vmul.f32 %v1201_v1, %v2783_v49  ;;  %1289 = vmatpush.bf16.msrb.mxu0 %v3898_v29 }
 0x304   :  { %v1275_v0 = vpack.c.bf16 %v1253_v36, %v1252_v63  ;;  %v3905_v36 = vld [vmem:[#allocation33_spill] sm:$0xff] }
 0x305   :  { %1290 = vmatmul.bf16.vlgmr.msrb.gmra.mxu0 %v3899_v8 }
 0x309   :  { %v1204_v13 = vpop.f32.mrf.mxu3 }
 0x30a   :  { %v1254_v55 = vmul.f32 %v1204_v13, %v2771_v37 }
 0x311   :  { %v1206_v24 = vpop.f32.mrf.mxu3 }
 0x312   :  { %v1255_v2 = vmul.f32 %v1206_v24, %v2773_v38 }
 0x314   :  { %v1276_v58 = vpack.c.bf16 %v1255_v2, %v1254_v55 }
 0x315   :  { %1295 = vmatmul.bf16.gmra.mxu0 %v3900_v11 }
 0x319   :  { %v1209_v42 = vpop.f32.mrf.mxu3 }
 0x31a   :  { %v1256_v17 = vmul.f32 %v1209_v42, %v2763_v30 }
 0x321   :  { %v1211_v54 = vpop.f32.mrf.mxu3 }
 0x322   :  { %v1257_v59 = vmul.f32 %v1211_v54, %v2765_v31  ;;  %v3906_v54 = vld [vmem:[#allocation36_spill] sm:$0xff] }
 0x324   :  { %v1277_v51 = vpack.c.bf16 %v1257_v59, %v1256_v17  ;;  %v3907_v17 = vld [vmem:[#allocation17_spill] sm:$0xff]  ;;  %v3908_v59 = vld [vmem:[#allocation16_spill] sm:$0xff] }
 0x325   :  { %1300 = vmatmul.bf16.gmra.mxu0 %v3901_v28  ;;  %v3909_v28 = vld [vmem:[#allocation20_spill] sm:$0xff] }
 0x329   :  { %v1214_v3 = vpop.f32.mrf.mxu3 }
 0x32a   :  { %v1258_v11 = vmul.f32 %v1214_v3, %v2755_v22  ;;  %v3912_v3 = vld [vmem:[#allocation22_spill] sm:$0xff] }
 0x331   :  { %v1216_v18 = vpop.f32.mrf.mxu3 }
 0x332   :  { %v1259_v55 = vmul.f32 %v1216_v18, %v2757_v25  ;;  %v3911_v18 = vld [vmem:[#allocation23_spill] sm:$0xff] }
 0x334   :  { %v1278_v42 = vpack.c.bf16 %v1259_v55, %v1258_v11  ;;  %v3922_v55 = vld [vmem:[#allocation39_spill] sm:$0xff] }
 0x335   :  { %1305 = vmatmul.bf16.gmra.mxu0 %v3902_v57  ;;  %v3910_v57 = vld [vmem:[#allocation19_spill] sm:$0xff] }
 0x339   :  { %v1219_v33 = vpop.f32.mrf.mxu3 }
 0x33a   :  { %v1260_v24 = vmul.f32 %v1219_v33, %v2745_v15  ;;  %v3913_v33 = vld [vmem:[#allocation26_spill] sm:$0xff] }
 0x341   :  { %v1221_v60 = vpop.f32.mrf.mxu3 }
 0x342   :  { %v1261_v8 = vmul.f32 %v1221_v60, %v2747_v16  ;;  %v3914_v60 = vld [vmem:[#allocation25_spill] sm:$0xff] }
 0x344   :  { %v1279_v2 = vpack.c.bf16 %v1261_v8, %v1260_v24 }
 0x345   :  { %1310 = vmatmul.bf16.gmra.mxu0 %v3903_v20  ;;  %v3917_v20 = vld [vmem:[#allocation28_spill] sm:$0xff] }
 0x349   :  { %v1224_v7 = vpop.f32.mrf.mxu3 }
 0x34a   :  { %v1262_v29 = vmul.f32 %v1224_v7, %v2725_v5  ;;  %v3918_v7 = vld [vmem:[#allocation35_spill] sm:$0xff] }
 0x351   :  { %v1226_v45 = vpop.f32.mrf.mxu3 }
 0x352   :  { %v1263_v1 = vmul.f32 %v1226_v45, %v2735_v10 }
 0x354   :  { %v1280_v13 = vpack.c.bf16 %v1263_v1, %v1262_v29  ;;  %v3921_v29 = vld [vmem:[#allocation34_spill] sm:$0xff] }
 0x355   :  { %1315 = vmatmul.bf16.gmra.mxu0 %v3904_v14 }
 0x359   :  { %v1229_v6 = vpop.f32.mrf.mxu3 }
 0x35a   :  { %v1264_v61 = vmul.f32 %v1229_v6, %v2723_v4  ;;  %v3919_v6 = vld [vmem:[#allocation31_spill] sm:$0xff] }
 0x361   :  { %v1231_v34 = vpop.f32.mrf.mxu3 }
 0x362   :  { %v1265_v47 = vmul.f32 %v1231_v34, %v2733_v9  ;;  %v3920_v34 = vld [vmem:[#allocation38_spill] sm:$0xff] }
 0x364   :  { %v1281_v63 = vpack.c.bf16 %v1265_v47, %v1264_v61  ;;  %v1528_v47 = vlaneseq }
 0x365   :  { %1320 = vmatmul.bf16.gmra.mxu0 %v3905_v36 }
 0x366   :  { %1371 = vmatpush.bf16.msrb.mxu1 %v1281_v63  ;;  %v3343_v63 = vand.u32 127, %v1528_v47 }
 0x368   :  { %vm1530_vm0 = vcmp.lt.s32.totalorder %v3343_v63, 10 }
 0x36a   :  { %1372 = vmatpush.bf16.msrb.mxu1 %v1280_v13  ;;  %v3349_v13 = vld [vmem:[%s3818_s6] ss:$0 sm:$0xff]  ;;  %s2553_s6 = smov [#allocation8]  }
 0x36b   :  { %s1951_s22 = sshll.u32 %s2553_s6, 4  ;;  %s1952_s22 = int_to_ptr.vmem [resolvable:$true] %s1951_s22 }
 0x36e   :  { %1373 = vmatpush.bf16.msrb.mxu1 %v1279_v2 }
 0x372   :  { %1374 = vmatpush.bf16.msrb.mxu1 %v1278_v42 }
 0x375   :  { %1325 = vmatmul.bf16.gmra.mxu0 %v3906_v54 }
 0x376   :  { %1375 = vmatpush.bf16.msrb.mxu1 %v1277_v51  ;;  %v3915_v51 = vld [vmem:[#allocation29_spill] sm:$0xff] }
 0x37a   :  { %1376 = vmatpush.bf16.msrb.mxu1 %v1276_v58 }
 0x37e   :  { %1377 = vmatpush.bf16.msrb.mxu1 %v1275_v0  ;;  %v3916_v0 = vld [vmem:[#allocation32_spill] sm:$0xff] }
 0x382   :  { %1378 = vmatpush.bf16.msrb.mxu1 %v1274_v23  ;;  %v1291_v23 = vpop.f32.mrf.mxu0 }
 0x385   :  { %1379 = vmatmul.bf16.vlgmr.msrb.gmra.mxu1 %v3907_v17  ;;  %1330 = vmatmul.bf16.gmra.mxu0 %v3908_v59 }
 0x38a   :  { %v1293_v58 = vpop.f32.mrf.mxu0 }
 0x392   :  { %v1296_v45 = vpop.f32.mrf.mxu0 }
 0x395   :  { %1384 = vmatmul.bf16.gmra.mxu1 %v3909_v28  ;;  %1335 = vmatmul.bf16.gmra.mxu0 %v3910_v57 }
 0x39a   :  { %v1298_v14 = vpop.f32.mrf.mxu0 }
 0x3a2   :  { %v1301_v61 = vpop.f32.mrf.mxu0 }
 0x3a5   :  { %1389 = vmatmul.bf16.gmra.mxu1 %v3911_v18  ;;  %1340 = vmatmul.bf16.gmra.mxu0 %v3912_v3  ;;  %v3923_v3 = vld [vmem:[#allocation37_spill] sm:$0xff] }
 0x3aa   :  { %v1303_v36 = vpop.f32.mrf.mxu0 }
 0x3b2   :  { %v1306_v54 = vpop.f32.mrf.mxu0 }
 0x3b5   :  { %1394 = vmatmul.bf16.gmra.mxu1 %v3913_v33  ;;  %1345 = vmatmul.bf16.gmra.mxu0 %v3914_v60 }
 0x3ba   :  { %v1308_v18 = vpop.f32.mrf.mxu0 }
 0x3c5   :  { %1399 = vmatmul.bf16.gmra.mxu1 %v3915_v51  ;;  %1350 = vmatmul.bf16.gmra.mxu0 %v3917_v20  ;;  %v3924_v51 = vld [vmem:[#allocation40_spill] sm:$0xff] }
 0x3d5   :  { %1404 = vmatmul.bf16.gmra.mxu1 %v3916_v0  ;;  %1355 = vmatmul.bf16.gmra.mxu0 %v3919_v6 }
 0x3e5   :  { %1409 = vmatmul.bf16.gmra.mxu1 %v3918_v7  ;;  %1360 = vmatmul.bf16.gmra.mxu0 %v3921_v29  ;;  %v3925_v29 = vld [vmem:[#allocation41_spill] sm:$0xff] }
 0x3f5   :  { %1414 = vmatmul.bf16.gmra.mxu1 %v3920_v34  ;;  %1365 = vmatmul.bf16.gmra.mxu0 %v3923_v3 }
 0x402   :  { %v1380_v1 = vpop.f32.mrf.mxu1 }
 0x403   :  { %v1381_v8 = vadd.f32 %v1380_v1, %v1291_v23 }
 0x405   :  { %v1460_v24 = vmul.f32 %v1381_v8, %v2830_v39  ;;  %1419 = vmatmul.bf16.gmra.mxu1 %v3922_v55 }
 0x407   :  { %v1496_v2 = vadd.f32 %v3349_v13, %v1460_v24 }
 0x409   :  { %v3357_v11 = vsel %vm1530_vm0, %v1496_v2, -1e+30 }
 0x40a   :  { %v1382_v42 = vpop.f32.mrf.mxu1  ;;  %1563 = vmax.xlane.f32.xlu2 %v3357_v11 }
 0x40b   :  { %v1383_v17 = vadd.f32 %v1382_v42, %v1293_v58  ;;  %v1311_v58 = vpop.f32.mrf.mxu0 }
 0x40d   :  { %v1461_v59 = vmul.f32 %v1383_v17, %v2828_v46 }
 0x40f   :  { %v1497_v28 = vadd.f32 %v3349_v13, %v1461_v59 }
 0x411   :  { %v3364_v39 = vsel %vm1530_vm0, %v1497_v28, -1e+30 }
 0x412   :  { %v1385_v57 = vpop.f32.mrf.mxu1  ;;  %1565 = vmax.xlane.f32.xlu0 %v3364_v39 }
 0x413   :  { %v1386_v33 = vadd.f32 %v1385_v57, %v1296_v45  ;;  %v1313_v34 = vpop.f32.mrf.mxu0  ;;  %v3926_v57 = vld [vmem:[#allocation42_spill] sm:$0xff] }
 0x415   :  { %v1462_v60 = vmul.f32 %v1386_v33, %v2804_v40  ;;  %1424 = vmatmul.bf16.gmra.mxu1 %v3924_v51 }
 0x417   :  { %v1498_v0 = vadd.f32 %v3349_v13, %v1462_v60 }
 0x419   :  { %v3373_v46 = vsel %vm1530_vm0, %v1498_v0, -1e+30 }
 0x41a   :  { %v1387_v23 = vpop.f32.mrf.mxu1  ;;  %1567 = vmax.xlane.f32.xlu1 %v3373_v46 }
 0x41b   :  { %v1388_v20 = vadd.f32 %v1387_v23, %v1298_v14  ;;  %v1316_v24 = vpop.f32.mrf.mxu0 }
 0x41d   :  { %v1463_v7 = vmul.f32 %v1388_v20, %v2818_v56 }
 0x41f   :  { %v1499_v6 = vadd.f32 %v3349_v13, %v1463_v7  ;;  %v3927_v7 = vld [vmem:[#allocation43_spill] sm:$0xff] }
 0x421   :  { %v3380_v40 = vsel %vm1530_vm0, %v1499_v6, -1e+30 }
 0x422   :  { %v1390_v45 = vpop.f32.mrf.mxu1  ;;  %1569 = vmax.xlane.f32.xlu2 %v3380_v40 }
 0x423   :  { %v1391_v47 = vadd.f32 %v1390_v45, %v1301_v61  ;;  %v1318_v17 = vpop.f32.mrf.mxu0 }
 0x425   :  { %v1464_v1 = vmul.f32 %v1391_v47, %v2788_v53  ;;  %1429 = vmatmul.bf16.gmra.mxu1 %v3925_v29 }
 0x427   :  { %v1500_v8 = vadd.f32 %v3349_v13, %v1464_v1 }
 0x429   :  { %v3388_v56 = vsel %vm1530_vm0, %v1500_v8, -1e+30 }
 0x42a   :  { %v1392_v14 = vpop.f32.mrf.mxu1  ;;  %1571 = vmax.xlane.f32.xlu2 %v3388_v56 }
 0x42b   :  { %v1393_v55 = vadd.f32 %v1392_v14, %v1303_v36  ;;  %v1321_v60 = vpop.f32.mrf.mxu0 }
 0x42d   :  { %v1465_v2 = vmul.f32 %v1393_v55, %v2786_v52 }
 0x42f   :  { %v1501_v42 = vadd.f32 %v3349_v13, %v1465_v2  ;;  %v3928_v2 = vld [vmem:[#allocation44_spill] sm:$0xff] }
 0x431   :  { %v3395_v53 = vsel %vm1530_vm0, %v1501_v42, -1e+30 }
 0x432   :  { %v1395_v61 = vpop.f32.mrf.mxu1  ;;  %1573 = vmax.xlane.f32.xlu0 %v3395_v53 }
 0x433   :  { %v1396_v59 = vadd.f32 %v1395_v61, %v1306_v54  ;;  %v1323_v6 = vpop.f32.mrf.mxu0 }
 0x435   :  { %v1466_v28 = vmul.f32 %v1396_v59, %v2775_v41  ;;  %1434 = vmatmul.bf16.gmra.mxu1 %v3926_v57 }
 0x437   :  { %v1502_v3 = vadd.f32 %v3349_v13, %v1466_v28 }
 0x439   :  { %v3403_v52 = vsel %vm1530_vm0, %v1502_v3, -1e+30 }
 0x43a   :  { %v1397_v36 = vpop.f32.mrf.mxu1  ;;  %1575 = vmax.xlane.f32.xlu1 %v3403_v52 }
 0x43b   :  { %v1398_v33 = vadd.f32 %v1397_v36, %v1308_v18 }
 0x43d   :  { %v1467_v51 = vmul.f32 %v1398_v33, %v2779_v44 }
 0x43f   :  { %v1503_v0 = vadd.f32 %v3349_v13, %v1467_v51  ;;  %v3929_v51 = vld [vmem:[#allocation45_spill] sm:$0xff] }
 0x441   :  { %v3410_v41 = vsel %vm1530_vm0, %v1503_v0, -1e+30 }
 0x442   :  { %v1400_v54 = vpop.f32.mrf.mxu1  ;;  %1577 = vmax.xlane.f32.xlu2 %v3410_v41 }
 0x443   :  { %v1401_v23 = vadd.f32 %v1400_v54, %v1311_v58  ;;  %v1326_v58 = vpop.f32.mrf.mxu0 }
 0x445   :  { %v1468_v20 = vmul.f32 %v1401_v23, %v2767_v32  ;;  %1439 = vmatmul.bf16.gmra.mxu1 %v3927_v7 }
 0x447   :  { %v1504_v18 = vadd.f32 %v3349_v13, %v1468_v20 }
 0x449   :  { %v3418_v44 = vsel %vm1530_vm0, %v1504_v18, -1e+30 }
 0x44a   :  { %v1402_v45 = vpop.f32.mrf.mxu1  ;;  %1579 = vmax.xlane.f32.xlu0 %v3418_v44 }
 0x44b   :  { %v1403_v47 = vadd.f32 %v1402_v45, %v1313_v34  ;;  %v1328_v61 = vpop.f32.mrf.mxu0 }
 0x44d   :  { %v1469_v1 = vmul.f32 %v1403_v47, %v2769_v35  ;;  %v3930_v47 = vld [vmem:[#allocation46_spill] sm:$0xff] }
 0x44f   :  { %v1505_v29 = vadd.f32 %v3349_v13, %v1469_v1 }
 0x451   :  { %v3425_v32 = vsel %vm1530_vm0, %v1505_v29, -1e+30 }
 0x452   :  { %v1405_v8 = vpop.f32.mrf.mxu1  ;;  %1581 = vmax.xlane.f32.xlu1 %v3425_v32 }
 0x453   :  { %v1406_v14 = vadd.f32 %v1405_v8, %v1316_v24  ;;  %v1331_v36 = vpop.f32.mrf.mxu0 }
 0x455   :  { %v1470_v55 = vmul.f32 %v1406_v14, %v2759_v26  ;;  %1444 = vmatmul.bf16.gmra.mxu1 %v3928_v2 }
 0x457   :  { %v1506_v42 = vadd.f32 %v3349_v13, %v1470_v55 }
 0x459   :  { %v3433_v35 = vsel %vm1530_vm0, %v1506_v42, -1e+30 }
 0x45a   :  { %v1407_v34 = vpop.f32.mrf.mxu1  ;;  %1583 = vmax.xlane.f32.xlu2 %v3433_v35 }
 0x45b   :  { %v1408_v59 = vadd.f32 %v1407_v34, %v1318_v17  ;;  %v1333_v20 = vpop.f32.mrf.mxu0 }
 0x45d   :  { %v1471_v28 = vmul.f32 %v1408_v59, %v2761_v27 }
 0x45f   :  { %v1507_v57 = vadd.f32 %v3349_v13, %v1471_v28 }
 0x461   :  { %v3440_v26 = vsel %vm1530_vm0, %v1507_v57, -1e+30 }
 0x462   :  { %v1410_v24 = vpop.f32.mrf.mxu1  ;;  %1585 = vmax.xlane.f32.xlu0 %v3440_v26 }
 0x463   :  { %v1411_v3 = vadd.f32 %v1410_v24, %v1321_v60 }
 0x465   :  { %v1472_v33 = vmul.f32 %v1411_v3, %v2751_v19  ;;  %1449 = vmatmul.bf16.gmra.mxu1 %v3929_v51 }
 0x467   :  { %v1508_v0 = vadd.f32 %v3349_v13, %v1472_v33 }
 0x469   :  { %v3448_v27 = vsel %vm1530_vm0, %v1508_v0, -1e+30 }
 0x46a   :  { %v1412_v17 = vpop.f32.mrf.mxu1  ;;  %1587 = vmax.xlane.f32.xlu1 %v3448_v27 }
 0x46b   :  { %v1413_v54 = vadd.f32 %v1412_v17, %v1323_v6  ;;  %v1336_v6 = vpop.f32.mrf.mxu0 }
 0x46d   :  { %v1473_v23 = vmul.f32 %v1413_v54, %v3893_v12 }
 0x46f   :  { %v1509_v60 = vadd.f32 %v3349_v13, %v1473_v23 }
 0x471   :  { %v3455_v19 = vsel %vm1530_vm0, %v1509_v60, -1e+30 }
 0x472   :  { %v1415_v7 = vpop.f32.mrf.mxu1  ;;  %1589 = vmax.xlane.f32.xlu2 %v3455_v19 }
 0x473   :  { %v1416_v18 = vadd.f32 %v1415_v7, %v1326_v58  ;;  %v1338_v59 = vpop.f32.mrf.mxu0 }
 0x475   :  { %v1474_v45 = vmul.f32 %v1416_v18, %v3894_v62  ;;  %1454 = vmatmul.bf16.gmra.mxu1 %v3930_v47 }
 0x477   :  { %v1510_v1 = vadd.f32 %v3349_v13, %v1474_v45 }
 0x479   :  { %v3463_v12 = vsel %vm1530_vm0, %v1510_v1, -1e+30 }
 0x47a   :  { %v1417_v29 = vpop.f32.mrf.mxu1  ;;  %1591 = vmax.xlane.f32.xlu0 %v3463_v12 }
 0x47b   :  { %v1418_v8 = vadd.f32 %v1417_v29, %v1328_v61 }
 0x47d   :  { %v1475_v14 = vmul.f32 %v1418_v8, %v3895_v48  ;;  %v1564_v55 = vpop.xlane.xlu2 %1563 }
 0x47e   :  { %v3468_v58 = vsub.f32 %v3357_v11, %v1564_v55 }
 0x47f   :  { %v1511_v62 = vadd.f32 %v3349_v13, %v1475_v14 }
 0x480   :  { %v1659_v2 = vmul.f32 1.442695, %v3468_v58 }
 0x481   :  { %v3474_v42 = vsel %vm1530_vm0, %v1511_v62, -1e+30 }
 0x482   :  { %2317 = vpow2.f32 %v1659_v2  ;;  %v1420_v34 = vpop.f32.mrf.mxu1  ;;  %1593 = vmax.xlane.f32.xlu1 %v3474_v42 }
 0x483   :  { %v1421_v61 = vadd.f32 %v1420_v34, %v1331_v36 }
 0x485   :  { %v1476_v48 = vmul.f32 %v1421_v61, %v2799_v21  ;;  %v1566_v28 = vpop.xlane.xlu0 %1565 }
 0x486   :  { %v3479_v11 = vsub.f32 %v3364_v39, %v1566_v28  ;;  %v1341_v39 = vpop.f32.mrf.mxu0 }
 0x487   :  { %v1512_v57 = vadd.f32 %v3349_v13, %v1476_v48 }
 0x488   :  { %v2318_v24 = vpop.eup %2317  ;;  %v1661_v3 = vmul.f32 1.442695, %v3479_v11 }
 0x489   :  { %v3485_v33 = vsel %vm1530_vm0, %v1512_v57, -1e+30  ;;  %v1723_v51 = vsel %vm1530_vm0, %v2318_v24, 0.0 }
 0x48a   :  { %2319 = vpow2.f32 %v1661_v3  ;;  %v1422_v36 = vpop.f32.mrf.mxu1  ;;  %1595 = vmax.xlane.f32.xlu2 %v3485_v33  ;;  %1755 = vadd.xlane.f32.xlu0 %v1723_v51 }
 0x48b   :  { %v1423_v21 = vadd.f32 %v1422_v36, %v1333_v20 }
 0x48d   :  { %v1477_v0 = vmul.f32 %v1423_v21, %v2802_v50  ;;  %v1568_v17 = vpop.xlane.xlu1 %1567 }
 0x48e   :  { %v3492_v54 = vsub.f32 %v3373_v46, %v1568_v17  ;;  %v1343_v29 = vpop.f32.mrf.mxu0 }
 0x48f   :  { %v1513_v23 = vadd.f32 %v3349_v13, %v1477_v0 }
 0x490   :  { %v2320_v60 = vpop.eup %2319  ;;  %v1663_v7 = vmul.f32 1.442695, %v3492_v54 }
 0x491   :  { %v1724_v18 = vsel %vm1530_vm0, %v2320_v60, 0.0  ;;  %v3500_v45 = vsel %vm1530_vm0, %v1513_v23, -1e+30 }
 0x492   :  { %2321 = vpow2.f32 %v1663_v7  ;;  %v1425_v20 = vpop.f32.mrf.mxu1  ;;  %1757 = vadd.xlane.f32.xlu1 %v1724_v18  ;;  %1597 = vmax.xlane.f32.xlu0 %v3500_v45 }
 0x493   :  { %v1426_v50 = vadd.f32 %v1425_v20, %v1336_v6 }
 0x495   :  { %v1478_v46 = vmul.f32 %v1426_v50, %v2777_v43  ;;  %v1570_v47 = vpop.xlane.xlu2 %1569 }
 0x496   :  { %v3505_v1 = vsub.f32 %v3380_v40, %v1570_v47  ;;  %v1346_v24 = vpop.f32.mrf.mxu0 }
 0x497   :  { %v1514_v8 = vadd.f32 %v3349_v13, %v1478_v46 }
 0x498   :  { %v2322_v14 = vpop.eup %2321  ;;  %v1665_v55 = vmul.f32 1.442695, %v3505_v1 }
 0x499   :  { %v3511_v62 = vsel %vm1530_vm0, %v1514_v8, -1e+30  ;;  %v1725_v2 = vsel %vm1530_vm0, %v2322_v14, 0.0 }
 0x49a   :  { %2323 = vpow2.f32 %v1665_v55  ;;  %v1427_v6 = vpop.f32.mrf.mxu1  ;;  %1599 = vmax.xlane.f32.xlu1 %v3511_v62  ;;  %1759 = vadd.xlane.f32.xlu2 %v1725_v2 }
 0x49b   :  { %v1428_v43 = vadd.f32 %v1427_v6, %v1338_v59 }
 0x49d   :  { %v1479_v40 = vmul.f32 %v1428_v43, %v2783_v49  ;;  %v1572_v34 = vpop.xlane.xlu2 %1571 }
 0x49e   :  { %v3518_v61 = vsub.f32 %v3388_v56, %v1572_v34 }
 0x49f   :  { %v1515_v48 = vadd.f32 %v3349_v13, %v1479_v40 }
 0x4a0   :  { %v2324_v28 = vpop.eup %2323  ;;  %v1667_v57 = vmul.f32 1.442695, %v3518_v61 }
 0x4a1   :  { %v3524_v3 = vsel %vm1530_vm0, %v1515_v48, -1e+30  ;;  %v1726_v51 = vsel %vm1530_vm0, %v2324_v28, 0.0 }
 0x4a2   :  { %2325 = vpow2.f32 %v1667_v57  ;;  %v1430_v59 = vpop.f32.mrf.mxu1  ;;  %1601 = vmax.xlane.f32.xlu2 %v3524_v3  ;;  %1761 = vadd.xlane.f32.xlu0 %v1726_v51 }
 0x4a3   :  { %v1431_v49 = vadd.f32 %v1430_v59, %v1341_v39 }
 0x4a5   :  { %v1480_v56 = vmul.f32 %v1431_v49, %v2771_v37  ;;  %v1574_v36 = vpop.xlane.xlu0 %1573  ;;  %v1348_v37 = vpop.f32.mrf.mxu0 }
 0x4a6   :  { %v3531_v21 = vsub.f32 %v3395_v53, %v1574_v36 }
 0x4a7   :  { %v1516_v0 = vadd.f32 %v3349_v13, %v1480_v56 }
 0x4a8   :  { %v2326_v17 = vpop.eup %2325  ;;  %v1669_v23 = vmul.f32 1.442695, %v3531_v21 }
 0x4a9   :  { %v3537_v60 = vsel %vm1530_vm0, %v1516_v0, -1e+30  ;;  %v1727_v7 = vsel %vm1530_vm0, %v2326_v17, 0.0 }
 0x4aa   :  { %2327 = vpow2.f32 %v1669_v23  ;;  %v1432_v39 = vpop.f32.mrf.mxu1  ;;  %1603 = vmax.xlane.f32.xlu0 %v3537_v60  ;;  %1763 = vadd.xlane.f32.xlu1 %v1727_v7 }
 0x4ab   :  { %v1433_v53 = vadd.f32 %v1432_v39, %v1343_v29 }
 0x4ad   :  { %v1481_v18 = vmul.f32 %v1433_v53, %v2773_v38  ;;  %v1576_v20 = vpop.xlane.xlu1 %1575 }
 0x4ae   :  { %v3544_v50 = vsub.f32 %v3403_v52, %v1576_v20  ;;  %v1351_v52 = vpop.f32.mrf.mxu0 }
 0x4af   :  { %v1517_v46 = vadd.f32 %v3349_v13, %v1481_v18 }
 0x4b0   :  { %v2328_v47 = vpop.eup %2327  ;;  %v1671_v8 = vmul.f32 1.442695, %v3544_v50 }
 0x4b1   :  { %v1728_v14 = vsel %vm1530_vm0, %v2328_v47, 0.0  ;;  %v3552_v55 = vsel %vm1530_vm0, %v1517_v46, -1e+30 }
 0x4b2   :  { %2329 = vpow2.f32 %v1671_v8  ;;  %v1435_v29 = vpop.f32.mrf.mxu1  ;;  %1765 = vadd.xlane.f32.xlu2 %v1728_v14  ;;  %1605 = vmax.xlane.f32.xlu1 %v3552_v55 }
 0x4b3   :  { %v1436_v38 = vadd.f32 %v1435_v29, %v1346_v24 }
 0x4b5   :  { %v1482_v2 = vmul.f32 %v1436_v38, %v2763_v30  ;;  %v1578_v6 = vpop.xlane.xlu2 %1577 }
 0x4b6   :  { %v3557_v43 = vsub.f32 %v3410_v41, %v1578_v6  ;;  %v1353_v49 = vpop.f32.mrf.mxu0 }
 0x4b7   :  { %v1518_v40 = vadd.f32 %v3349_v13, %v1482_v2 }
 0x4b8   :  { %v2330_v34 = vpop.eup %2329  ;;  %v1673_v48 = vmul.f32 1.442695, %v3557_v43 }
 0x4b9   :  { %v3563_v28 = vsel %vm1530_vm0, %v1518_v40, -1e+30  ;;  %v1729_v57 = vsel %vm1530_vm0, %v2330_v34, 0.0 }
 0x4ba   :  { %2331 = vpow2.f32 %v1673_v48  ;;  %v1437_v24 = vpop.f32.mrf.mxu1  ;;  %1607 = vmax.xlane.f32.xlu2 %v3563_v28  ;;  %1767 = vadd.xlane.f32.xlu0 %v1729_v57 }
 0x4bb   :  { %v1438_v30 = vadd.f32 %v1437_v24, %v1348_v37 }
 0x4bd   :  { %v1483_v41 = vmul.f32 %v1438_v30, %v2765_v31  ;;  %v1580_v51 = vpop.xlane.xlu0 %1579 }
 0x4be   :  { %v3570_v59 = vsub.f32 %v3418_v44, %v1580_v51  ;;  %v1356_v46 = vpop.f32.mrf.mxu0 }
 0x4bf   :  { %v1519_v56 = vadd.f32 %v3349_v13, %v1483_v41 }
 0x4c0   :  { %v2332_v36 = vpop.eup %2331  ;;  %v1675_v0 = vmul.f32 1.442695, %v3570_v59 }
 0x4c1   :  { %v3576_v17 = vsel %vm1530_vm0, %v1519_v56, -1e+30  ;;  %v1730_v23 = vsel %vm1530_vm0, %v2332_v36, 0.0 }
 0x4c2   :  { %2333 = vpow2.f32 %v1675_v0  ;;  %v1440_v7 = vpop.f32.mrf.mxu1  ;;  %1609 = vmax.xlane.f32.xlu0 %v3576_v17  ;;  %1769 = vadd.xlane.f32.xlu1 %v1730_v23 }
 0x4c3   :  { %v1441_v31 = vadd.f32 %v1440_v7, %v1351_v52 }
 0x4c5   :  { %v1484_v44 = vmul.f32 %v1441_v31, %v2755_v22  ;;  %v1582_v39 = vpop.xlane.xlu1 %1581 }
 0x4c6   :  { %v3583_v37 = vsub.f32 %v3425_v32, %v1582_v39 }
 0x4c7   :  { %v1520_v53 = vadd.f32 %v3349_v13, %v1484_v44 }
 0x4c8   :  { %v2334_v18 = vpop.eup %2333  ;;  %v1677_v20 = vmul.f32 1.442695, %v3583_v37 }
 0x4c9   :  { %v1731_v47 = vsel %vm1530_vm0, %v2334_v18, 0.0  ;;  %v3591_v8 = vsel %vm1530_vm0, %v1520_v53, -1e+30 }
 0x4ca   :  { %2335 = vpow2.f32 %v1677_v20  ;;  %v1442_v14 = vpop.f32.mrf.mxu1  ;;  %1771 = vadd.xlane.f32.xlu2 %v1731_v47  ;;  %1611 = vmax.xlane.f32.xlu1 %v3591_v8 }
 0x4cb   :  { %v1443_v22 = vadd.f32 %v1442_v14, %v1353_v49 }
 0x4cd   :  { %v1485_v32 = vmul.f32 %v1443_v22, %v2757_v25  ;;  %v1584_v29 = vpop.xlane.xlu2 %1583  ;;  %v1358_v25 = vpop.f32.mrf.mxu0 }
 0x4ce   :  { %v3596_v38 = vsub.f32 %v3433_v35, %v1584_v29 }
 0x4cf   :  { %v1521_v52 = vadd.f32 %v3349_v13, %v1485_v32 }
 0x4d0   :  { %v2336_v2 = vpop.eup %2335  ;;  %v1679_v6 = vmul.f32 1.442695, %v3596_v38 }
 0x4d1   :  { %v3602_v40 = vsel %vm1530_vm0, %v1521_v52, -1e+30  ;;  %v1732_v34 = vsel %vm1530_vm0, %v2336_v2, 0.0 }
 0x4d2   :  { %2337 = vpow2.f32 %v1679_v6  ;;  %v1445_v48 = vpop.f32.mrf.mxu1  ;;  %1613 = vmax.xlane.f32.xlu2 %v3602_v40  ;;  %1773 = vadd.xlane.f32.xlu0 %v1732_v34 }
 0x4d3   :  { %v1446_v35 = vadd.f32 %v1445_v48, %v1356_v46 }
 0x4d5   :  { %v1486_v57 = vmul.f32 %v1446_v35, %v2745_v15  ;;  %v1361_v36 = vpop.f32.mrf.mxu0  ;;  %v1586_v22 = vpop.xlane.xlu0 %1585 }
 0x4d7   :  { %v1522_v24 = vadd.f32 %v3349_v13, %v1486_v57 }
 0x4d8   :  { %v2338_v30 = vpop.eup %2337 }
 0x4d9   :  { %v3611_v41 = vsel %vm1530_vm0, %v1522_v24, -1e+30  ;;  %v1733_v51 = vsel %vm1530_vm0, %v2338_v30, 0.0  ;;  %v3651_v30 = vsub.f32 %v3440_v26, %v1586_v22 }
 0x4da   :  { %v1447_v49 = vpop.f32.mrf.mxu1  ;;  %1615 = vmax.xlane.f32.xlu0 %v3611_v41  ;;  %1775 = vadd.xlane.f32.xlu1 %v1733_v51 }
 0x4db   :  { %v1448_v56 = vadd.f32 %v1447_v49, %v1358_v25  ;;  %v1681_v26 = vmul.f32 1.442695, %v3651_v30 }
 0x4dd   :  { %v1487_v0 = vmul.f32 %v1448_v56, %v2747_v16  ;;  %v1588_v44 = vpop.xlane.xlu1 %1587  ;;  %v1363_v53 = vpop.f32.mrf.mxu0 }
 0x4de   :  { %v3626_v20 = vsub.f32 %v3448_v27, %v1588_v44 }
 0x4df   :  { %v1523_v15 = vadd.f32 %v3349_v13, %v1487_v0 }
 0x4e0   :  { %v1683_v14 = vmul.f32 1.442695, %v3626_v20 }
 0x4e1   :  { %v3620_v23 = vsel %vm1530_vm0, %v1523_v15, -1e+30 }
 0x4e2   :  { %v1450_v7 = vpop.f32.mrf.mxu1  ;;  %1617 = vmax.xlane.f32.xlu1 %v3620_v23  ;;  %2339 = vpow2.f32 %v1683_v14 }
 0x4e3   :  { %v1451_v31 = vadd.f32 %v1450_v7, %v1361_v36 }
 0x4e5   :  { %v1488_v39 = vmul.f32 %v1451_v31, %v2725_v5  ;;  %v1590_v5 = vpop.xlane.xlu2 %1589  ;;  %v1366_v52 = vpop.f32.mrf.mxu0 }
 0x4e6   :  { %v3637_v27 = vsub.f32 %v3455_v19, %v1590_v5 }
 0x4e7   :  { %v1524_v18 = vadd.f32 %v3349_v13, %v1488_v39 }
 0x4e8   :  { %v1685_v48 = vmul.f32 1.442695, %v3637_v27  ;;  %v2340_v57 = vpop.eup %2339 }
 0x4e9   :  { %v3630_v16 = vsel %vm1530_vm0, %v1524_v18, -1e+30  ;;  %v1735_v49 = vsel %vm1530_vm0, %v2340_v57, 0.0 }
 0x4ea   :  { %v1452_v46 = vpop.f32.mrf.mxu1  ;;  %1619 = vmax.xlane.f32.xlu2 %v3630_v16  ;;  %2341 = vpow2.f32 %v1685_v48 }
 0x4eb   :  { %v1453_v47 = vadd.f32 %v1452_v46, %v1363_v53 }
 0x4ed   :  { %v1489_v32 = vmul.f32 %v1453_v47, %v2735_v10  ;;  %v1592_v25 = vpop.xlane.xlu0 %1591 }
 0x4ee   :  { %v3668_v18 = vsub.f32 %v3463_v12, %v1592_v25 }
 0x4ef   :  { %v1525_v29 = vadd.f32 %v3349_v13, %v1489_v32 }
 0x4f0   :  { %v2342_v44 = vpop.eup %2341  ;;  %v1687_v12 = vmul.f32 1.442695, %v3668_v18 }
 0x4f1   :  { %v3641_v2 = vsel %vm1530_vm0, %v1525_v29, -1e+30 }
 0x4f2   :  { %v1455_v6 = vpop.f32.mrf.mxu1  ;;  %1621 = vmax.xlane.f32.xlu0 %v3641_v2 }
 0x4f3   :  { %v1456_v34 = vadd.f32 %v1455_v6, %v1366_v52 }
 0x4f5   :  { %v1490_v10 = vmul.f32 %v1456_v34, %v2723_v4  ;;  %v1594_v35 = vpop.xlane.xlu1 %1593  ;;  %v1368_v4 = vpop.f32.mrf.mxu0 }
 0x4f6   :  { %v3647_v24 = vsub.f32 %v3474_v42, %v1594_v35 }
 0x4f7   :  { %v1526_v19 = vadd.f32 %v3349_v13, %v1490_v10 }
 0x4f8   :  { %v1689_v51 = vmul.f32 1.442695, %v3647_v24 }
 0x4f9   :  { %v3658_v56 = vsel %vm1530_vm0, %v1526_v19, -1e+30 }
 0x4fa   :  { %2343 = vpow2.f32 %v1689_v51  ;;  %v1457_v36 = vpop.f32.mrf.mxu1  ;;  %1779 = vadd.xlane.f32.xlu0 %v1735_v49  ;;  %1623 = vmax.xlane.f32.xlu1 %v3658_v56 }
 0x4fb   :  { %v1458_v42 = vadd.f32 %v1457_v36, %v1368_v4 }
 0x4fd   :  { %v1491_v0 = vmul.f32 %v1458_v42, %v2733_v9  ;;  %v1756_v15 = vpop.xlane.xlu0 %1755  ;;  %v1596_v7 = vpop.xlane.xlu2 %1595 }
 0x4fe   :  { %2345 = vlog2.f32 %v1756_v15  ;;  %v3664_v31 = vsub.f32 %v3485_v33, %v1596_v7 }
 0x4ff   :  { %v1527_v39 = vadd.f32 %v3349_v13, %v1491_v0  ;;  %2347 = vpow2.f32 %v1681_v26  ;;  %v1736_v13 = vsel %vm1530_vm0, %v2342_v44, 0.0 }
 0x500   :  { %v2344_v53 = vpop.eup %2343  ;;  %v1691_v46 = vmul.f32 1.442695, %v3664_v31 }
 0x501   :  { %v3673_v47 = vsel %vm1530_vm0, %v1527_v39, -1e+30  ;;  %v1738_v9 = vsel %vm1530_vm0, %v2344_v53, 0.0 }
 0x502   :  { %2349 = vpow2.f32 %v1691_v46  ;;  %1625 = vmax.xlane.f32.xlu2 %v3673_v47  ;;  %1785 = vadd.xlane.f32.xlu0 %v1738_v9 }
 0x503   :  { %1781 = vadd.xlane.f32.xlu1 %v1736_v13 }
 0x504   :  { %v2346_v33 = vpop.eup %2345 }
 0x505   :  { %v1820_v14 = vmul.f32 0.6931472, %v2346_v33  ;;  %v1758_v22 = vpop.xlane.xlu1 %1757  ;;  %v1598_v32 = vpop.xlane.xlu0 %1597 }
 0x506   :  { %v2348_v5 = vpop.eup %2347  ;;  %2351 = vlog2.f32 %v1758_v22  ;;  %v3683_v6 = vsub.f32 %v3500_v45, %v1598_v32 }
 0x507   :  { %v1883_v29 = vsub.f32 %v3468_v58, %v1820_v14  ;;  %2353 = vpow2.f32 %v1687_v12  ;;  %v1734_v34 = vsel %vm1530_vm0, %v2348_v5, 0.0 }
 0x508   :  { %v2350_v52 = vpop.eup %2349  ;;  %v1693_v10 = vmul.f32 1.442695, %v3683_v6 }
 0x509   :  { %1915 = vst [vmem:[#allocation8] sm:$0xff] %v1883_v29  ;;  %v1739_v48 = vsel %vm1530_vm0, %v2350_v52, 0.0 }
 0x50a   :  { %1777 = vadd.xlane.f32.xlu2 %v1734_v34 }
 0x50b   :  { %1787 = vadd.xlane.f32.xlu1 %v1739_v48 }
 0x50c   :  { %v2352_v25 = vpop.eup %2351 }
 0x50d   :  { %v1822_v35 = vmul.f32 0.6931472, %v2352_v25  ;;  %v1600_v57 = vpop.xlane.xlu1 %1599  ;;  %v1760_v58 = vpop.xlane.xlu2 %1759 }
 0x50e   :  { %v2354_v19 = vpop.eup %2353  ;;  %v3691_v51 = vsub.f32 %v3511_v62, %v1600_v57  ;;  %2355 = vlog2.f32 %v1760_v58 }
 0x50f   :  { %v1884_v45 = vsub.f32 %v3479_v11, %v1822_v35  ;;  %2357 = vpow2.f32 %v1693_v10  ;;  %v1737_v4 = vsel %vm1530_vm0, %v2354_v19, 0.0 }
 0x510   :  { %v1695_v49 = vmul.f32 1.442695, %v3691_v51 }
 0x511   :  { %1916 = vst [vmem:[#allocation8 + $0x8] sm:$0xff] %v1884_v45 }
 0x512   :  { %2359 = vpow2.f32 %v1695_v49  ;;  %1783 = vadd.xlane.f32.xlu2 %v1737_v4 }
 0x514   :  { %v2356_v36 = vpop.eup %2355 }
 0x515   :  { %v1824_v42 = vmul.f32 0.6931472, %v2356_v36  ;;  %v1762_v26 = vpop.xlane.xlu0 %1761  ;;  %v1602_v0 = vpop.xlane.xlu2 %1601 }
 0x516   :  { %v2358_v15 = vpop.eup %2357  ;;  %2361 = vlog2.f32 %v1762_v26  ;;  %v3698_v62 = vsub.f32 %v3524_v3, %v1602_v0 }
 0x517   :  { %v1885_v11 = vsub.f32 %v3492_v54, %v1824_v42  ;;  %v1740_v39 = vsel %vm1530_vm0, %v2358_v15, 0.0 }
 0x518   :  { %v2360_v7 = vpop.eup %2359  ;;  %v1697_v44 = vmul.f32 1.442695, %v3698_v62 }
 0x519   :  { %1917 = vst [vmem:[#allocation8 + $0x10] sm:$0xff] %v1885_v11  ;;  %v1741_v53 = vsel %vm1530_vm0, %v2360_v7, 0.0 }
 0x51a   :  { %2363 = vpow2.f32 %v1697_v44  ;;  %1789 = vadd.xlane.f32.xlu2 %v1740_v39  ;;  %1791 = vadd.xlane.f32.xlu0 %v1741_v53 }
 0x51c   :  { %v2362_v46 = vpop.eup %2361 }
 0x51d   :  { %v1826_v9 = vmul.f32 0.6931472, %v2362_v46  ;;  %v1604_v13 = vpop.xlane.xlu0 %1603  ;;  %v1764_v3 = vpop.xlane.xlu1 %1763 }
 0x51e   :  { %v3707_v33 = vsub.f32 %v3537_v60, %v1604_v13  ;;  %2365 = vlog2.f32 %v1764_v3 }
 0x51f   :  { %v1886_v54 = vsub.f32 %v3505_v1, %v1826_v9 }
 0x520   :  { %v2364_v12 = vpop.eup %2363  ;;  %v1699_v14 = vmul.f32 1.442695, %v3707_v33 }
 0x521   :  { %1918 = vst [vmem:[#allocation8 + $0x18] sm:$0xff] %v1886_v54  ;;  %v1742_v22 = vsel %vm1530_vm0, %v2364_v12, 0.0 }
 0x522   :  { %2367 = vpow2.f32 %v1699_v14  ;;  %1793 = vadd.xlane.f32.xlu1 %v1742_v22 }
 0x524   :  { %v2366_v32 = vpop.eup %2365 }
 0x525   :  { %v1828_v5 = vmul.f32 0.6931472, %v2366_v32  ;;  %v1606_v29 = vpop.xlane.xlu1 %1605  ;;  %v1766_v52 = vpop.xlane.xlu2 %1765 }
 0x526   :  { %v3714_v34 = vsub.f32 %v3552_v55, %v1606_v29  ;;  %2369 = vlog2.f32 %v1766_v52 }
 0x527   :  { %v1887_v60 = vsub.f32 %v3518_v61, %v1828_v5 }
 0x528   :  { %v2368_v1 = vpop.eup %2367  ;;  %v1701_v48 = vmul.f32 1.442695, %v3714_v34 }
 0x529   :  { %1919 = vst [vmem:[#allocation8 + $0x20] sm:$0xff] %v1887_v60  ;;  %v1743_v25 = vsel %vm1530_vm0, %v2368_v1, 0.0 }
 0x52a   :  { %2371 = vpow2.f32 %v1701_v48  ;;  %1795 = vadd.xlane.f32.xlu2 %v1743_v25 }
 0x52c   :  { %v2370_v10 = vpop.eup %2369 }
 0x52d   :  { %v1830_v35 = vmul.f32 0.6931472, %v2370_v10  ;;  %v1768_v57 = vpop.xlane.xlu0 %1767  ;;  %v1608_v58 = vpop.xlane.xlu2 %1607 }
 0x52e   :  { %2373 = vlog2.f32 %v1768_v57  ;;  %v3721_v55 = vsub.f32 %v3563_v28, %v1608_v58 }
 0x52f   :  { %v1888_v19 = vsub.f32 %v3531_v21, %v1830_v35 }
 0x530   :  { %v2372_v61 = vpop.eup %2371  ;;  %v1703_v45 = vmul.f32 1.442695, %v3721_v55 }
 0x531   :  { %1920 = vst [vmem:[#allocation8 + $0x28] sm:$0xff] %v1888_v19  ;;  %v1744_v49 = vsel %vm1530_vm0, %v2372_v61, 0.0 }
 0x532   :  { %2375 = vpow2.f32 %v1703_v45  ;;  %1797 = vadd.xlane.f32.xlu0 %v1744_v49 }
 0x534   :  { %v2374_v4 = vpop.eup %2373 }
 0x535   :  { %v1832_v36 = vmul.f32 0.6931472, %v2374_v4  ;;  %v1610_v42 = vpop.xlane.xlu0 %1609  ;;  %v1770_v26 = vpop.xlane.xlu1 %1769 }
 0x536   :  { %v3728_v0 = vsub.f32 %v3576_v17, %v1610_v42  ;;  %2377 = vlog2.f32 %v1770_v26 }
 0x537   :  { %v1889_v28 = vsub.f32 %v3544_v50, %v1832_v36 }
 0x538   :  { %v2376_v21 = vpop.eup %2375  ;;  %v1705_v15 = vmul.f32 1.442695, %v3728_v0 }
 0x539   :  { %1921 = vst [vmem:[#allocation8 + $0x30] sm:$0xff] %v1889_v28  ;;  %v1745_v11 = vsel %vm1530_vm0, %v2376_v21, 0.0 }
 0x53a   :  { %2379 = vpow2.f32 %v1705_v15  ;;  %1799 = vadd.xlane.f32.xlu1 %v1745_v11 }
 0x53c   :  { %v2378_v7 = vpop.eup %2377 }
 0x53d   :  { %v1834_v44 = vmul.f32 0.6931472, %v2378_v7  ;;  %v1612_v39 = vpop.xlane.xlu1 %1611  ;;  %v1772_v53 = vpop.xlane.xlu2 %1771 }
 0x53e   :  { %v3735_v46 = vsub.f32 %v3591_v8, %v1612_v39  ;;  %2381 = vlog2.f32 %v1772_v53 }
 0x53f   :  { %v1890_v17 = vsub.f32 %v3557_v43, %v1834_v44 }
 0x540   :  { %v2380_v50 = vpop.eup %2379  ;;  %v1707_v9 = vmul.f32 1.442695, %v3735_v46 }
 0x541   :  { %1922 = vst [vmem:[#allocation8 + $0x38] sm:$0xff] %v1890_v17  ;;  %v1746_v13 = vsel %vm1530_vm0, %v2380_v50, 0.0 }
 0x542   :  { %2383 = vpow2.f32 %v1707_v9  ;;  %1801 = vadd.xlane.f32.xlu2 %v1746_v13 }
 0x544   :  { %v2382_v3 = vpop.eup %2381 }
 0x545   :  { %v1836_v54 = vmul.f32 0.6931472, %v2382_v3  ;;  %v1774_v12 = vpop.xlane.xlu0 %1773  ;;  %v1614_v14 = vpop.xlane.xlu2 %1613 }
 0x546   :  { %2385 = vlog2.f32 %v1774_v12  ;;  %v3742_v8 = vsub.f32 %v3602_v40, %v1614_v14 }
 0x547   :  { %v1891_v22 = vsub.f32 %v3570_v59, %v1836_v54 }
 0x548   :  { %v2384_v43 = vpop.eup %2383  ;;  %v1709_v32 = vmul.f32 1.442695, %v3742_v8 }
 0x549   :  { %1923 = vst [vmem:[#allocation8 + $0x40] sm:$0xff] %v1891_v22  ;;  %v1747_v5 = vsel %vm1530_vm0, %v2384_v43, 0.0 }
 0x54a   :  { %2387 = vpow2.f32 %v1709_v32  ;;  %1803 = vadd.xlane.f32.xlu0 %v1747_v5 }
 0x54c   :  { %v2386_v29 = vpop.eup %2385 }
 0x54d   :  { %v1838_v52 = vmul.f32 0.6931472, %v2386_v29  ;;  %v1616_v60 = vpop.xlane.xlu0 %1615  ;;  %v1776_v1 = vpop.xlane.xlu1 %1775 }
 0x54e   :  { %v3749_v48 = vsub.f32 %v3611_v41, %v1616_v60  ;;  %2389 = vlog2.f32 %v1776_v1 }
 0x54f   :  { %v1892_v40 = vsub.f32 %v3583_v37, %v1838_v52 }
 0x550   :  { %v2388_v59 = vpop.eup %2387  ;;  %v1711_v25 = vmul.f32 1.442695, %v3749_v48 }
 0x551   :  { %1924 = vst [vmem:[#allocation8 + $0x48] sm:$0xff] %v1892_v40  ;;  %v1748_v10 = vsel %vm1530_vm0, %v2388_v59, 0.0 }
 0x552   :  { %2391 = vpow2.f32 %v1711_v25  ;;  %1805 = vadd.xlane.f32.xlu1 %v1748_v10 }
 0x554   :  { %v2390_v35 = vpop.eup %2389 }
 0x555   :  { %v1840_v57 = vmul.f32 0.6931472, %v2390_v35  ;;  %v1618_v58 = vpop.xlane.xlu1 %1617 }
 0x556   :  { %v3756_v19 = vsub.f32 %v3620_v23, %v1618_v58 }
 0x557   :  { %v1893_v41 = vsub.f32 %v3596_v38, %v1840_v57 }
 0x558   :  { %v2392_v61 = vpop.eup %2391  ;;  %v1713_v37 = vmul.f32 1.442695, %v3756_v19 }
 0x559   :  { %1925 = vst [vmem:[#allocation8 + $0x50] sm:$0xff] %v1893_v41  ;;  %v1749_v45 = vsel %vm1530_vm0, %v2392_v61, 0.0 }
 0x55a   :  { %2393 = vpow2.f32 %v1713_v37  ;;  %1807 = vadd.xlane.f32.xlu2 %v1749_v45 }
 0x55d   :  { %v1620_v49 = vpop.xlane.xlu2 %1619 }
 0x55e   :  { %v3763_v4 = vsub.f32 %v3630_v16, %v1620_v49 }
 0x560   :  { %v2394_v36 = vpop.eup %2393  ;;  %v1715_v42 = vmul.f32 1.442695, %v3763_v4 }
 0x561   :  { %v1750_v23 = vsel %vm1530_vm0, %v2394_v36, 0.0 }
 0x562   :  { %2395 = vpow2.f32 %v1715_v42  ;;  %1809 = vadd.xlane.f32.xlu0 %v1750_v23 }
 0x565   :  { %v1622_v38 = vpop.xlane.xlu0 %1621 }
 0x566   :  { %v3769_v26 = vsub.f32 %v3641_v2, %v1622_v38 }
 0x568   :  { %v2396_v28 = vpop.eup %2395  ;;  %v1717_v21 = vmul.f32 1.442695, %v3769_v26 }
 0x569   :  { %v1751_v15 = vsel %vm1530_vm0, %v2396_v28, 0.0 }
 0x56a   :  { %2397 = vpow2.f32 %v1717_v21  ;;  %1811 = vadd.xlane.f32.xlu1 %v1751_v15 }
 0x56d   :  { %v1780_v16 = vpop.xlane.xlu0 %1779  ;;  %v1624_v11 = vpop.xlane.xlu1 %1623 }
 0x56e   :  { %2399 = vlog2.f32 %v1780_v16  ;;  %v3775_v7 = vsub.f32 %v3658_v56, %v1624_v11 }
 0x570   :  { %v2398_v44 = vpop.eup %2397  ;;  %v1719_v39 = vmul.f32 1.442695, %v3775_v7 }
 0x571   :  { %v1752_v2 = vsel %vm1530_vm0, %v2398_v44, 0.0 }
 0x572   :  { %2401 = vpow2.f32 %v1719_v39  ;;  %1813 = vadd.xlane.f32.xlu2 %v1752_v2 }
 0x574   :  { %v2400_v53 = vpop.eup %2399 }
 0x575   :  { %v1844_v17 = vmul.f32 0.6931472, %v2400_v53  ;;  %v1786_v50 = vpop.xlane.xlu0 %1785  ;;  %v1626_v9 = vpop.xlane.xlu2 %1625 }
 0x576   :  { %2403 = vlog2.f32 %v1786_v50  ;;  %v1782_v13 = vpop.xlane.xlu1 %1781  ;;  %v3781_v3 = vsub.f32 %v3673_v47, %v1626_v9 }
 0x577   :  { %v1895_v56 = vsub.f32 %v3626_v20, %v1844_v17  ;;  %2405 = vlog2.f32 %v1782_v13 }
 0x578   :  { %v2402_v54 = vpop.eup %2401  ;;  %v1721_v12 = vmul.f32 1.442695, %v3781_v3 }
 0x579   :  { %1927 = vst [vmem:[#allocation8 + $0x60] sm:$0xff] %v1895_v56  ;;  %v1753_v14 = vsel %vm1530_vm0, %v2402_v54, 0.0 }
 0x57a   :  { %2407 = vpow2.f32 %v1721_v12  ;;  %1815 = vadd.xlane.f32.xlu0 %v1753_v14 }
 0x57c   :  { %v2404_v22 = vpop.eup %2403 }
 0x57d   :  { %v2406_v43 = vpop.eup %2405  ;;  %v1850_v32 = vmul.f32 0.6931472, %v2404_v22  ;;  %v1778_v5 = vpop.xlane.xlu2 %1777 }
 0x57e   :  { %v1846_v29 = vmul.f32 0.6931472, %v2406_v43  ;;  %v1788_v52 = vpop.xlane.xlu1 %1787  ;;  %2409 = vlog2.f32 %v1778_v5 }
 0x57f   :  { %v1898_v47 = vsub.f32 %v3647_v24, %v1850_v32  ;;  %2411 = vlog2.f32 %v1788_v52 }
 0x580   :  { %v2408_v20 = vpop.eup %2407  ;;  %v1896_v60 = vsub.f32 %v3637_v27, %v1846_v29 }
 0x581   :  { %1930 = vst [vmem:[#allocation8 + $0x78] sm:$0xff] %v1898_v47  ;;  %v1754_v1 = vsel %vm1530_vm0, %v2408_v20, 0.0 }
 0x582   :  { %1928 = vst [vmem:[#allocation8 + $0x68] sm:$0xff] %v1896_v60  ;;  %1817 = vadd.xlane.f32.xlu1 %v1754_v1 }
 0x584   :  { %v2410_v40 = vpop.eup %2409 }
 0x585   :  { %v2412_v59 = vpop.eup %2411  ;;  %v1842_v25 = vmul.f32 0.6931472, %v2410_v40  ;;  %v1784_v10 = vpop.xlane.xlu2 %1783 }
 0x586   :  { %v1852_v35 = vmul.f32 0.6931472, %v2412_v59  ;;  %2413 = vlog2.f32 %v1784_v10 }
 0x587   :  { %v1894_v57 = vsub.f32 %v3651_v30, %v1842_v25 }
 0x588   :  { %v1899_v24 = vsub.f32 %v3664_v31, %v1852_v35 }
 0x589   :  { %1926 = vst [vmem:[#allocation8 + $0x58] sm:$0xff] %v1894_v57 }
 0x58a   :  { %1931 = vst [vmem:[#allocation8 + $0x80] sm:$0xff] %v1899_v24 }
 0x58c   :  { %v2414_v58 = vpop.eup %2413 }
 0x58d   :  { %v1848_v27 = vmul.f32 0.6931472, %v2414_v58  ;;  %v1792_v41 = vpop.xlane.xlu0 %1791  ;;  %v1790_v61 = vpop.xlane.xlu2 %1789 }
 0x58e   :  { %2415 = vlog2.f32 %v1792_v41 }
 0x58f   :  { %v1897_v63 = vsub.f32 %v3668_v18, %v1848_v27  ;;  %2417 = vlog2.f32 %v1790_v61 }
 0x591   :  { %1929 = vst [vmem:[#allocation8 + $0x70] sm:$0xff] %v1897_v63 }
 0x594   :  { %v2416_v37 = vpop.eup %2415 }
 0x595   :  { %v2418_v45 = vpop.eup %2417  ;;  %v1856_v49 = vmul.f32 0.6931472, %v2416_v37  ;;  %v1794_v36 = vpop.xlane.xlu1 %1793 }
 0x596   :  { %v1854_v42 = vmul.f32 0.6931472, %v2418_v45  ;;  %2419 = vlog2.f32 %v1794_v36 }
 0x597   :  { %v1901_v30 = vsub.f32 %v3691_v51, %v1856_v49 }
 0x598   :  { %v1900_v31 = vsub.f32 %v3683_v6, %v1854_v42 }
 0x599   :  { %1933 = vst [vmem:[#allocation8 + $0x90] sm:$0xff] %v1901_v30 }
 0x59a   :  { %1932 = vst [vmem:[#allocation8 + $0x88] sm:$0xff] %v1900_v31 }
 0x59c   :  { %v2420_v23 = vpop.eup %2419 }
 0x59d   :  { %v1858_v38 = vmul.f32 0.6931472, %v2420_v23  ;;  %v1796_v28 = vpop.xlane.xlu2 %1795 }
 0x59e   :  { %2421 = vlog2.f32 %v1796_v28 }
 0x59f   :  { %v1902_v18 = vsub.f32 %v3698_v62, %v1858_v38 }
 0x5a1   :  { %1934 = vst [vmem:[#allocation8 + $0x98] sm:$0xff] %v1902_v18 }
 0x5a4   :  { %v2422_v21 = vpop.eup %2421 }
 0x5a5   :  { %v1860_v15 = vmul.f32 0.6931472, %v2422_v21  ;;  %v1798_v16 = vpop.xlane.xlu0 %1797 }
 0x5a6   :  { %2423 = vlog2.f32 %v1798_v16 }
 0x5a7   :  { %v1903_v11 = vsub.f32 %v3707_v33, %v1860_v15 }
 0x5a9   :  { %1935 = vst [vmem:[#allocation8 + $0xa0] sm:$0xff] %v1903_v11 }
 0x5ac   :  { %v2424_v44 = vpop.eup %2423 }
 0x5ad   :  { %v1862_v51 = vmul.f32 0.6931472, %v2424_v44  ;;  %v1800_v39 = vpop.xlane.xlu1 %1799 }
 0x5ae   :  { %2425 = vlog2.f32 %v1800_v39 }
 0x5af   :  { %v1904_v6 = vsub.f32 %v3714_v34, %v1862_v51 }
 0x5b1   :  { %1936 = vst [vmem:[#allocation8 + $0xa8] sm:$0xff] %v1904_v6 }
 0x5b4   :  { %v2426_v2 = vpop.eup %2425 }
 0x5b5   :  { %v1864_v53 = vmul.f32 0.6931472, %v2426_v2  ;;  %v1802_v17 = vpop.xlane.xlu2 %1801 }
 0x5b6   :  { %2427 = vlog2.f32 %v1802_v17 }
 0x5b7   :  { %v1905_v62 = vsub.f32 %v3721_v55, %v1864_v53 }
 0x5b9   :  { %1937 = vst [vmem:[#allocation8 + $0xb0] sm:$0xff] %v1905_v62 }
 0x5bc   :  { %v2428_v50 = vpop.eup %2427 }
 0x5bd   :  { %v1866_v9 = vmul.f32 0.6931472, %v2428_v50  ;;  %v1804_v13 = vpop.xlane.xlu0 %1803 }
 0x5be   :  { %2429 = vlog2.f32 %v1804_v13 }
 0x5bf   :  { %v1906_v33 = vsub.f32 %v3728_v0, %v1866_v9 }
 0x5c1   :  { %1938 = vst [vmem:[#allocation8 + $0xb8] sm:$0xff] %v1906_v33 }
 0x5c4   :  { %v2430_v56 = vpop.eup %2429 }
 0x5c5   :  { %v1868_v54 = vmul.f32 0.6931472, %v2430_v56  ;;  %v1806_v12 = vpop.xlane.xlu1 %1805 }
 0x5c6   :  { %2431 = vlog2.f32 %v1806_v12 }
 0x5c7   :  { %v1907_v34 = vsub.f32 %v3735_v46, %v1868_v54 }
 0x5c9   :  { %1939 = vst [vmem:[#allocation8 + $0xc0] sm:$0xff] %v1907_v34 }
 0x5cc   :  { %v2432_v14 = vpop.eup %2431 }
 0x5cd   :  { %v1870_v22 = vmul.f32 0.6931472, %v2432_v14  ;;  %v1808_v43 = vpop.xlane.xlu2 %1807 }
 0x5ce   :  { %2433 = vlog2.f32 %v1808_v43 }
 0x5cf   :  { %v1908_v55 = vsub.f32 %v3742_v8, %v1870_v22 }
 0x5d1   :  { %1940 = vst [vmem:[#allocation8 + $0xc8] sm:$0xff] %v1908_v55 }
 0x5d4   :  { %v2434_v32 = vpop.eup %2433 }
 0x5d5   :  { %v1872_v5 = vmul.f32 0.6931472, %v2434_v32  ;;  %v1810_v29 = vpop.xlane.xlu0 %1809 }
 0x5d6   :  { %2435 = vlog2.f32 %v1810_v29 }
 0x5d7   :  { %v1909_v0 = vsub.f32 %v3749_v48, %v1872_v5 }
 0x5d9   :  { %1941 = vst [vmem:[#allocation8 + $0xd0] sm:$0xff] %v1909_v0 }
 0x5dc   :  { %v2436_v52 = vpop.eup %2435 }
 0x5dd   :  { %v1874_v47 = vmul.f32 0.6931472, %v2436_v52  ;;  %v1812_v20 = vpop.xlane.xlu1 %1811 }
 0x5de   :  { %2437 = vlog2.f32 %v1812_v20 }
 0x5df   :  { %v1910_v46 = vsub.f32 %v3756_v19, %v1874_v47 }
 0x5e1   :  { %1942 = vst [vmem:[#allocation8 + $0xd8] sm:$0xff] %v1910_v46 }
 0x5e4   :  { %v2438_v60 = vpop.eup %2437 }
 0x5e5   :  { %v1876_v1 = vmul.f32 0.6931472, %v2438_v60  ;;  %v1814_v40 = vpop.xlane.xlu2 %1813 }
 0x5e6   :  { %2439 = vlog2.f32 %v1814_v40 }
 0x5e7   :  { %v1911_v8 = vsub.f32 %v3763_v4, %v1876_v1 }
 0x5e9   :  { %1943 = vst [vmem:[#allocation8 + $0xe0] sm:$0xff] %v1911_v8 }
 0x5ec   :  { %v2440_v59 = vpop.eup %2439 }
 0x5ed   :  { %v1878_v25 = vmul.f32 0.6931472, %v2440_v59  ;;  %v1816_v10 = vpop.xlane.xlu0 %1815 }
 0x5ee   :  { %2441 = vlog2.f32 %v1816_v10 }
 0x5ef   :  { %v1912_v48 = vsub.f32 %v3769_v26, %v1878_v25 }
 0x5f1   :  { %1944 = vst [vmem:[#allocation8 + $0xe8] sm:$0xff] %v1912_v48 }
 0x5f4   :  { %v2442_v35 = vpop.eup %2441 }
 0x5f5   :  { %v1880_v57 = vmul.f32 0.6931472, %v2442_v35  ;;  %v1818_v24 = vpop.xlane.xlu1 %1817 }
 0x5f6   :  { %2443 = vlog2.f32 %v1818_v24 }
 0x5f7   :  { %v1913_v19 = vsub.f32 %v3775_v7, %v1880_v57 }
 0x5f9   :  { %1945 = vst [vmem:[#allocation8 + $0xf0] sm:$0xff] %v1913_v19 }
 0x5fc   :  { %v2444_v4 = vpop.eup %2443 }
 0x5fd   :  { %v1882_v58 = vmul.f32 0.6931472, %v2444_v4 }
 0x5ff   :  { %v1914_v26 = vsub.f32 %v3781_v3, %v1882_v58 }
 0x601   :  { %1946 = vst [vmem:[#allocation8 + $0xf8] sm:$0xff] %v1914_v26 }
 0x602   :  { %1959 = dma.vmem_to_hbm [thread:$0]  %s1952_s22, 4096, %s1954_s4, [#allocation4], %s2554_s25, %s2554_s25, %s2555_s26  }
 0x603   :  { %2545 = dma.done.wait [#allocation4], 4096  }
 0x604   :  { %2546 = vsyncadd [#allocation4], 4294963200 }
 0x605   :  { %1964 = vsyncpa [#allocation3], 1 }
 0x606   :  { %1965 = vsyncpa [#allocation6], 1 }
 0x607   :  { %1966 = vsyncpa [#allocation4], 1 }

</bundles_post_ra>
